<compile_context>
chip_gen: v6e
topology: v6e:2x2x1
jax: 0.10.0
libtpu: 0.0.40
codegen_flags: <defaults>
</compile_context>

<pallas_src>
import functools

import numpy as np

import jax
import jax.numpy as jnp
from jax.experimental import pallas as pl
from jax.experimental.pallas import tpu as pltpu


def get_positional_embeddings_matrix(max_pos, embed_dim):
    """Sinusoidal positional embeddings, same formula as the PyTorch module."""
    mat = np.zeros((max_pos, embed_dim), dtype=np.float64)
    pos_idxs = np.arange(0, max_pos).reshape(max_pos, 1)
    div_term = np.exp(np.arange(0, embed_dim, 2) * np.log(10000.0) / embed_dim)
    mat[:, 0::2] = np.sin(pos_idxs * div_term)
    mat[:, 1::2] = np.cos(pos_idxs * div_term)
    return jnp.asarray(mat, dtype=jnp.float32)   # forward casts the table to f32


# ---------------------------------------------------------------------------
# Pallas kernel: full GPT forward (token embed -> decoder blocks -> logits).
# ---------------------------------------------------------------------------
def _gpt_kernel(ids_ref, tok_emb_ref, pos_ref,
                ln1_g_ref, ln1_b_ref, wqkv_ref, wproj_ref, bproj_ref,
                ln2_g_ref, ln2_b_ref, lnf_g_ref, lnf_b_ref,
                wout_ref, bout_ref, o_ref,
                *, n_layers, n_heads, head_dim, batch, seq):
    B, T, H, D = batch, seq, n_heads, head_dim
    E = H * D
    BT = B * T
    V = tok_emb_ref.shape[0]
    f32, bf16 = jnp.float32, jnp.bfloat16

    def layer_norm(x, g, b):
        # var = E[x^2] - mean^2: two independent cross-lane reductions (XLU)
        mu = jnp.mean(x, axis=-1, keepdims=True)
        ms = jnp.mean(x * x, axis=-1, keepdims=True)
        inv = jax.lax.rsqrt(ms - mu * mu + 1e-5)               # EUP rsqrt
        return (x - mu) * inv * g + b

    # ---- token + positional embeddings (one-hot MXU matmul; exact, f32) ----
    ids = ids_ref[...]                                          # [BT, 1] i32
    vocab_iota = jax.lax.broadcasted_iota(jnp.int32, (BT, V), 1)
    onehot = (vocab_iota == ids).astype(f32)                    # [BT, V]
    x = jnp.dot(onehot, tok_emb_ref[...],
                preferred_element_type=f32) + pos_ref[...]      # [BT, E] f32

    # ---- causal mask: built once, shared by every layer / head ----
    row = jax.lax.broadcasted_iota(jnp.int32, (T, T), 0)
    col = jax.lax.broadcasted_iota(jnp.int32, (T, T), 1)
    keep = col <= row                                           # [T, T]
    neg_big = jnp.float32(-1e30)                                # finite (robust vs -inf)

    for l in range(n_layers):                                   # small L: static unroll
        # ---- fused QKV projection; 1/sqrt(D) already folded into Q weights ----
        qkv = jnp.dot(x.astype(bf16), wqkv_ref[l],
                      preferred_element_type=f32)               # [BT, 3E] f32
        qkv = qkv.reshape(B, T, 3 * E)

        # head -> batch move via lane slices + leading-axis concat (safe relayout)
        def heads(which):                                       # -> [H*B, T, D] bf16
            base = which * E
            return jnp.concatenate(
                [qkv[:, :, base + h * D: base + (h + 1) * D] for h in range(H)],
                axis=0).astype(bf16)
        q, k, v = heads(0), heads(1), heads(2)

        # ---- batched-head causal attention: one pass over all H*B rows ----
        s = jnp.einsum('bqd,bkd->bqk', q, k,
                       preferred_element_type=f32)              # [HB, T, T] f32
        s = jnp.where(keep, s, neg_big)
        s = s - jnp.max(s, axis=-1, keepdims=True)
        p = jnp.exp(s)
        a = p / jnp.sum(p, axis=-1, keepdims=True)              # exact softmax division
        z = jnp.einsum('bqk,bkd->bqd', a.astype(bf16), v,
                       preferred_element_type=f32)              # [HB, T, D] f32

        # ---- re-interleave heads into lanes, single K=E output projection ----
        zcat = jnp.concatenate(
            [z[h * B:(h + 1) * B].reshape(BT, D) for h in range(H)],
            axis=-1)                                            # [BT, E]
        attn = jnp.dot(zcat.astype(bf16), wproj_ref[l],
                       preferred_element_type=f32) + bproj_ref[l]   # [BT, E]

        # ---- DecoderBlock wiring exactly as written in the reference ----
        x1 = layer_norm(x, ln1_g_ref[l], ln1_b_ref[l])
        x2 = x1 + attn
        x3 = layer_norm(x2, ln2_g_ref[l], ln2_b_ref[l])
        # reference forward never calls self.feedforward; it re-applies
        # ff_layer_norm instead -- semantics preserved.
        x = x3 + layer_norm(x3, ln2_g_ref[l], ln2_b_ref[l])

    # ---- final layer norm + vocab projection (lane-dense [BT, V=128] store) ----
    xf = layer_norm(x, lnf_g_ref[...], lnf_b_ref[...])
    logits = jnp.dot(xf.astype(bf16), wout_ref[...],
                     preferred_element_type=f32) + bout_ref[...]
    o_ref[...] = logits.astype(o_ref.dtype)


# ---------------------------------------------------------------------------
# One-time weight packing (hoisted out of the per-call hot path).
# ---------------------------------------------------------------------------
def prepack_params(p, batch):
    """Pre-transpose / fuse / cast all weights once; returns kernel-ready arrays."""
    V, E = p['tok_emb'].shape
    L, H = p['n_layers'], p['n_heads']
    D = E // H
    T = p['pos_emb'].shape[0]

    def head_major(w):                    # [L, H, D, E] -> [L, E, H*D]
        return jnp.transpose(w, (0, 3, 1, 2)).reshape(L, E, H * D)

    scale = 1.0 / (D ** 0.5)              # fold attention scale into Q weights
    wqkv = jnp.concatenate(
        [head_major(p['wq']) * scale, head_major(p['wk']), head_major(p['wv'])],
        axis=-1).astype(jnp.bfloat16)                            # [L, E, 3E]

    packed = {
        'n_layers': L, 'n_heads': H, 'batch': batch, 'seq': T,
        'tok_emb': p['tok_emb'],                                 # f32 (exact gather)
        'pos_bt': jnp.tile(p['pos_emb'][:T], (batch, 1)),        # [B*T, E]
        'wqkv': wqkv,
        'wproj': jnp.transpose(p['wproj'], (0, 2, 1)).astype(jnp.bfloat16),  # [L,E,E]
        'bproj': p['bproj'].reshape(L, 1, E),
        'ln1_g': p['ln1_g'].reshape(L, 1, E), 'ln1_b': p['ln1_b'].reshape(L, 1, E),
        'ln2_g': p['ln2_g'].reshape(L, 1, E), 'ln2_b': p['ln2_b'].reshape(L, 1, E),
        'lnf_g': p['lnf_g'].reshape(1, E), 'lnf_b': p['lnf_b'].reshape(1, E),
        'wout': p['w_lin'].T.astype(jnp.bfloat16),               # [E, V]
        'bout': p['b_lin'].reshape(1, V),
    }
    # materialize now so the packing cost is never paid in the forward path
    return {k: (jax.block_until_ready(v) if isinstance(v, jax.Array) else v)
            for k, v in packed.items()}


# ---------------------------------------------------------------------------
# Wrapper: single pallas_call, grid=(), whole model resident in VMEM.
# ---------------------------------------------------------------------------
def gpt_forward_pallas(ids, packed):
    B, T = ids.shape
    V, E = packed['tok_emb'].shape
    L, H = packed['n_layers'], packed['n_heads']
    D = E // H
    BT = B * T
    assert B == packed['batch'] and T == packed['seq'], "prepack batch/seq mismatch"

    ids2d = ids.reshape(BT, 1).astype(jnp.int32)

    kernel = functools.partial(_gpt_kernel, n_layers=L, n_heads=H,
                               head_dim=D, batch=B, seq=T)
    vmem = pl.BlockSpec(memory_space=pltpu.MemorySpace.VMEM)     # whole array in VMEM
    logits2d = pl.pallas_call(
        kernel,
        out_shape=jax.ShapeDtypeStruct((BT, V), jnp.float32),
        in_specs=[vmem] * 14,
        out_specs=vmem,
    )(ids2d, packed['tok_emb'], packed['pos_bt'],
      packed['ln1_g'], packed['ln1_b'], packed['wqkv'], packed['wproj'],
      packed['bproj'], packed['ln2_g'], packed['ln2_b'],
      packed['lnf_g'], packed['lnf_b'], packed['wout'], packed['bout'])
    return logits2d.reshape(B, T, V)


# ---------------------------------------------------------------------------
# Pure-JAX f32 reference mirroring the PyTorch forward (eval mode).
# ---------------------------------------------------------------------------
def _layer_norm_ref(x, g, b, eps=1e-5):
    mu = jnp.mean(x, axis=-1, keepdims=True)
    var = jnp.mean((x - mu) ** 2, axis=-1, keepdims=True)
    return (x - mu) / jnp.sqrt(var + eps) * g + b


def _mha_ref(x, wq, wk, wv, wp, bp):
    _, T, _ = x.shape
    H, Dh, _ = wq.shape
    outs = []
    for h in range(H):
        q = x @ wq[h].T
        k = x @ wk[h].T
        v = x @ wv[h].T
        s = (q @ jnp.swapaxes(k, 2, 1)) / (Dh ** 0.5)
        mask = jnp.tril(jnp.ones((T, T)))
        s = jnp.where(mask == 0, -jnp.inf, s)
        a = jax.nn.softmax(s, axis=-1)
        outs.append(a @ v)
    z = jnp.concatenate(outs, axis=2)
    return z @ wp.T + bp


def gpt_reference(ids, p):
    _, T = ids.shape
    x = p['tok_emb'][ids] + p['pos_emb'][:T]
    for l in range(p['n_layers']):
        attn = _mha_ref(x, p['wq'][l], p['wk'][l], p['wv'][l],
                        p['wproj'][l], p['bproj'][l])
        x1 = _layer_norm_ref(x, p['ln1_g'][l], p['ln1_b'][l])
        x2 = x1 + attn
        x3 = _layer_norm_ref(x2, p['ln2_g'][l], p['ln2_b'][l])
        x = x3 + _layer_norm_ref(x3, p['ln2_g'][l], p['ln2_b'][l])
    xf = _layer_norm_ref(x, p['lnf_g'], p['lnf_b'])
    return xf @ p['w_lin'].T + p['b_lin']


def init_params(key, vocab_s, embed_dim, block_s, n_heads, n_layers):
    D = embed_dim // n_heads
    ks = jax.random.split(key, 16)
    n = jax.random.normal
    return {
        'n_layers': n_layers, 'n_heads': n_heads,
        'tok_emb': n(ks[0], (vocab_s, embed_dim), jnp.float32),
        'pos_emb': get_positional_embeddings_matrix(block_s, embed_dim),
        'wq': n(ks[1], (n_layers, n_heads, D, embed_dim), jnp.float32) * 0.1,
        'wk': n(ks[2], (n_layers, n_heads, D, embed_dim), jnp.float32) * 0.1,
        'wv': n(ks[3], (n_layers, n_heads, D, embed_dim), jnp.float32) * 0.1,
        'wproj': n(ks[4], (n_layers, embed_dim, embed_dim), jnp.float32) * 0.1,
        'bproj': n(ks[5], (n_layers, embed_dim), jnp.float32) * 0.1,
        'ln1_g': 1.0 + 0.1 * n(ks[6], (n_layers, embed_dim), jnp.float32),
        'ln1_b': 0.1 * n(ks[7], (n_layers, embed_dim), jnp.float32),
        'ln2_g': 1.0 + 0.1 * n(ks[8], (n_layers, embed_dim), jnp.float32),
        'ln2_b': 0.1 * n(ks[9], (n_layers, embed_dim), jnp.float32),
        'lnf_g': 1.0 + 0.1 * n(ks[10], (embed_dim,), jnp.float32),
        'lnf_b': 0.1 * n(ks[11], (embed_dim,), jnp.float32),
        'w_lin': n(ks[12], (vocab_s, embed_dim), jnp.float32) * 0.1,
        'b_lin': 0.1 * n(ks[13], (vocab_s,), jnp.float32),
    }


if __name__ == "__main__":
    # Small shapes consistent with the module: vocab=128 (lane-dense logits),
    # embed_dim=32, block_s=T=8, 4 heads, 2 decoder blocks, batch=2.
    vocab_s, embed_dim, block_s, n_heads, n_layers = 128, 32, 8, 4, 2
    B, T = 2, block_s

    key = jax.random.PRNGKey(0)
    k_ids, k_params = jax.random.split(key)
    params = init_params(k_params, vocab_s, embed_dim, block_s, n_heads, n_layers)
    ids = jax.random.randint(k_ids, (B, T), 0, vocab_s, dtype=jnp.int32)

    packed = prepack_params(params, batch=B)      # one-time layout plumbing
    logits = gpt_forward_pallas(ids, packed)
    logits = jax.block_until_ready(logits)

    ref = gpt_reference(ids, params)              # pure f32 reference
    assert logits.shape == (B, T, vocab_s)
    max_diff = float(jnp.max(jnp.abs(logits - ref)))
    # tolerance reflects bfloat16 matmul operands (per perf review); the f32
    # reference logits are O(1), so 5e-2 still catches any wiring error.
    assert jnp.allclose(logits, ref, atol=5e-2, rtol=5e-2), \
        f"mismatch vs reference, max|diff|={max_diff:.3e}"

    print("KERNEL_OK")
</pallas_src>

<mosaic_0001>
module attributes {stable_mosaic.version = 11 : i64} {
  func.func @_gpt_kernel(%arg0: memref<16x1xi32, #tpu.memory_space<vmem>>, %arg1: memref<128x32xf32, #tpu.memory_space<vmem>>, %arg2: memref<16x32xf32, #tpu.memory_space<vmem>>, %arg3: memref<2x1x32xf32, #tpu.memory_space<vmem>>, %arg4: memref<2x1x32xf32, #tpu.memory_space<vmem>>, %arg5: memref<2x32x96xbf16, #tpu.memory_space<vmem>>, %arg6: memref<2x32x32xbf16, #tpu.memory_space<vmem>>, %arg7: memref<2x1x32xf32, #tpu.memory_space<vmem>>, %arg8: memref<2x1x32xf32, #tpu.memory_space<vmem>>, %arg9: memref<2x1x32xf32, #tpu.memory_space<vmem>>, %arg10: memref<1x32xf32, #tpu.memory_space<vmem>>, %arg11: memref<1x32xf32, #tpu.memory_space<vmem>>, %arg12: memref<32x128xbf16, #tpu.memory_space<vmem>>, %arg13: memref<1x128xf32, #tpu.memory_space<vmem>>, %arg14: memref<16x128xf32, #tpu.memory_space<vmem>>) attributes {dimension_semantics = [], scalar_prefetch = 0 : i64, scratch_operands = 0 : i64, tpu.core_type = #tpu.core_type<tc>} {
    %c0 = arith.constant 0 : index
    %c0_0 = arith.constant 0 : index
    %0 = vector.load %arg0[%c0, %c0_0] : memref<16x1xi32, #tpu.memory_space<vmem>>, vector<16x1xi32>
    %1 = tpu.iota {dimensions = array<i32: 1>} : vector<16x128xi32>
    %2 = vector.broadcast %0 : vector<16x1xi32> to vector<16x128xi32>
    %3 = arith.cmpi eq, %1, %2 : vector<16x128xi32>
    %4 = arith.extui %3 : vector<16x128xi1> to vector<16x128xi32>
    %5 = arith.sitofp %4 : vector<16x128xi32> to vector<16x128xf32>
    %c0_1 = arith.constant 0 : index
    %c0_2 = arith.constant 0 : index
    %6 = vector.load %arg1[%c0_1, %c0_2] : memref<128x32xf32, #tpu.memory_space<vmem>>, vector<128x32xf32>
    %cst = arith.constant dense<0.000000e+00> : vector<16x32xf32>
    %7 = tpu.matmul %5, %6, %cst {dimension_numbers = #tpu.dot_dimension_numbers<[1], [0], [0], [1], [0, 0, 1, 1], [], []>} : vector<16x128xf32>, vector<128x32xf32>, vector<16x32xf32> -> vector<16x32xf32>
    %c0_3 = arith.constant 0 : index
    %c0_4 = arith.constant 0 : index
    %8 = vector.load %arg2[%c0_3, %c0_4] : memref<16x32xf32, #tpu.memory_space<vmem>>, vector<16x32xf32>
    %9 = arith.addf %7, %8 : vector<16x32xf32>
    %10 = tpu.iota {dimensions = array<i32: 0>} : vector<8x8xi32>
    %11 = tpu.iota {dimensions = array<i32: 1>} : vector<8x8xi32>
    %12 = arith.cmpi sle, %11, %10 : vector<8x8xi32>
    %13 = arith.truncf %9 : vector<16x32xf32> to vector<16x32xbf16>
    %c0_5 = arith.constant 0 : index
    %c0_6 = arith.constant 0 : index
    %c0_7 = arith.constant 0 : index
    %14 = vector.load %arg5[%c0_5, %c0_6, %c0_7] : memref<2x32x96xbf16, #tpu.memory_space<vmem>>, vector<1x32x96xbf16>
    %15 = vector.shape_cast %14 : vector<1x32x96xbf16> to vector<32x96xbf16>
    %cst_8 = arith.constant dense<0.000000e+00> : vector<16x96xf32>
    %16 = tpu.matmul %13, %15, %cst_8 {dimension_numbers = #tpu.dot_dimension_numbers<[1], [0], [0], [1], [0, 0, 1, 1], [], []>} : vector<16x32xbf16>, vector<32x96xbf16>, vector<16x96xf32> -> vector<16x96xf32>
    %17 = vector.shape_cast %16 : vector<16x96xf32> to vector<2x8x96xf32>
    %18 = vector.extract_strided_slice %17 {offsets = [0, 0, 0], sizes = [2, 8, 8], strides = [1, 1, 1]} : vector<2x8x96xf32> to vector<2x8x8xf32>
    %19 = vector.extract_strided_slice %17 {offsets = [0, 0, 8], sizes = [2, 8, 8], strides = [1, 1, 1]} : vector<2x8x96xf32> to vector<2x8x8xf32>
    %20 = vector.extract_strided_slice %17 {offsets = [0, 0, 16], sizes = [2, 8, 8], strides = [1, 1, 1]} : vector<2x8x96xf32> to vector<2x8x8xf32>
    %21 = vector.extract_strided_slice %17 {offsets = [0, 0, 24], sizes = [2, 8, 8], strides = [1, 1, 1]} : vector<2x8x96xf32> to vector<2x8x8xf32>
    %22 = tpu.concatenate %18, %19, %20, %21 in 0 : vector<2x8x8xf32>, vector<2x8x8xf32>, vector<2x8x8xf32>, vector<2x8x8xf32> -> vector<8x8x8xf32>
    %23 = arith.truncf %22 : vector<8x8x8xf32> to vector<8x8x8xbf16>
    %24 = vector.extract_strided_slice %17 {offsets = [0, 0, 32], sizes = [2, 8, 8], strides = [1, 1, 1]} : vector<2x8x96xf32> to vector<2x8x8xf32>
    %25 = vector.extract_strided_slice %17 {offsets = [0, 0, 40], sizes = [2, 8, 8], strides = [1, 1, 1]} : vector<2x8x96xf32> to vector<2x8x8xf32>
    %26 = vector.extract_strided_slice %17 {offsets = [0, 0, 48], sizes = [2, 8, 8], strides = [1, 1, 1]} : vector<2x8x96xf32> to vector<2x8x8xf32>
    %27 = vector.extract_strided_slice %17 {offsets = [0, 0, 56], sizes = [2, 8, 8], strides = [1, 1, 1]} : vector<2x8x96xf32> to vector<2x8x8xf32>
    %28 = tpu.concatenate %24, %25, %26, %27 in 0 : vector<2x8x8xf32>, vector<2x8x8xf32>, vector<2x8x8xf32>, vector<2x8x8xf32> -> vector<8x8x8xf32>
    %29 = arith.truncf %28 : vector<8x8x8xf32> to vector<8x8x8xbf16>
    %30 = vector.extract_strided_slice %17 {offsets = [0, 0, 64], sizes = [2, 8, 8], strides = [1, 1, 1]} : vector<2x8x96xf32> to vector<2x8x8xf32>
    %31 = vector.extract_strided_slice %17 {offsets = [0, 0, 72], sizes = [2, 8, 8], strides = [1, 1, 1]} : vector<2x8x96xf32> to vector<2x8x8xf32>
    %32 = vector.extract_strided_slice %17 {offsets = [0, 0, 80], sizes = [2, 8, 8], strides = [1, 1, 1]} : vector<2x8x96xf32> to vector<2x8x8xf32>
    %33 = vector.extract_strided_slice %17 {offsets = [0, 0, 88], sizes = [2, 8, 8], strides = [1, 1, 1]} : vector<2x8x96xf32> to vector<2x8x8xf32>
    %34 = tpu.concatenate %30, %31, %32, %33 in 0 : vector<2x8x8xf32>, vector<2x8x8xf32>, vector<2x8x8xf32>, vector<2x8x8xf32> -> vector<8x8x8xf32>
    %35 = arith.truncf %34 : vector<8x8x8xf32> to vector<8x8x8xbf16>
    "tpu.trace_start"() <{level = 10 : i32, message = "bqd,bkd->bqk"}> : () -> ()
    %cst_9 = arith.constant dense<0.000000e+00> : vector<8x8x8xf32>
    %36 = tpu.matmul %23, %29, %cst_9 {dimension_numbers = #tpu.dot_dimension_numbers<[2], [2], [1], [1], [0, 0, 0, 1, 1, 1], [0], [0]>} : vector<8x8x8xbf16>, vector<8x8x8xbf16>, vector<8x8x8xf32> -> vector<8x8x8xf32>
    %cst_10 = arith.constant -1.000000e+30 : f32
    "tpu.trace_stop"() : () -> ()
    %37 = vector.shape_cast %12 : vector<8x8xi1> to vector<1x8x8xi1>
    %38 = vector.broadcast %37 : vector<1x8x8xi1> to vector<8x8x8xi1>
    %39 = vector.broadcast %cst_10 : f32 to vector<8x8x8xf32>
    %40 = arith.select %38, %36, %39 : vector<8x8x8xi1>, vector<8x8x8xf32>
    %cst_11 = arith.constant dense<0xFF800000> : vector<8x8xf32>
    %41 = vector.multi_reduction <maximumf>, %40, %cst_11 [2] : vector<8x8x8xf32> to vector<8x8xf32>
    %42 = vector.shape_cast %41 : vector<8x8xf32> to vector<8x8x1xf32>
    %43 = vector.broadcast %42 : vector<8x8x1xf32> to vector<8x8x8xf32>
    %44 = arith.subf %40, %43 : vector<8x8x8xf32>
    %45 = math.exp %44 : vector<8x8x8xf32>
    %cst_12 = arith.constant dense<0.000000e+00> : vector<8x8xf32>
    %46 = vector.multi_reduction <add>, %45, %cst_12 [2] : vector<8x8x8xf32> to vector<8x8xf32>
    %47 = vector.shape_cast %46 : vector<8x8xf32> to vector<8x8x1xf32>
    %48 = vector.broadcast %47 : vector<8x8x1xf32> to vector<8x8x8xf32>
    %49 = arith.divf %45, %48 : vector<8x8x8xf32>
    %50 = arith.truncf %49 : vector<8x8x8xf32> to vector<8x8x8xbf16>
    "tpu.trace_start"() <{level = 10 : i32, message = "bqk,bkd->bqd"}> : () -> ()
    %cst_13 = arith.constant dense<0.000000e+00> : vector<8x8x8xf32>
    %51 = tpu.matmul %50, %35, %cst_13 {dimension_numbers = #tpu.dot_dimension_numbers<[2], [1], [1], [2], [0, 0, 0, 1, 1, 2], [0], [0]>} : vector<8x8x8xbf16>, vector<8x8x8xbf16>, vector<8x8x8xf32> -> vector<8x8x8xf32>
    "tpu.trace_stop"() : () -> ()
    %52 = vector.extract_strided_slice %51 {offsets = [0, 0, 0], sizes = [2, 8, 8], strides = [1, 1, 1]} : vector<8x8x8xf32> to vector<2x8x8xf32>
    %53 = vector.shape_cast %52 : vector<2x8x8xf32> to vector<16x8xf32>
    %54 = vector.extract_strided_slice %51 {offsets = [2, 0, 0], sizes = [2, 8, 8], strides = [1, 1, 1]} : vector<8x8x8xf32> to vector<2x8x8xf32>
    %55 = vector.shape_cast %54 : vector<2x8x8xf32> to vector<16x8xf32>
    %56 = vector.extract_strided_slice %51 {offsets = [4, 0, 0], sizes = [2, 8, 8], strides = [1, 1, 1]} : vector<8x8x8xf32> to vector<2x8x8xf32>
    %57 = vector.shape_cast %56 : vector<2x8x8xf32> to vector<16x8xf32>
    %58 = vector.extract_strided_slice %51 {offsets = [6, 0, 0], sizes = [2, 8, 8], strides = [1, 1, 1]} : vector<8x8x8xf32> to vector<2x8x8xf32>
    %59 = vector.shape_cast %58 : vector<2x8x8xf32> to vector<16x8xf32>
    %60 = tpu.concatenate %53, %55, %57, %59 in 1 : vector<16x8xf32>, vector<16x8xf32>, vector<16x8xf32>, vector<16x8xf32> -> vector<16x32xf32>
    %61 = arith.truncf %60 : vector<16x32xf32> to vector<16x32xbf16>
    %c0_14 = arith.constant 0 : index
    %c0_15 = arith.constant 0 : index
    %c0_16 = arith.constant 0 : index
    %62 = vector.load %arg6[%c0_14, %c0_15, %c0_16] : memref<2x32x32xbf16, #tpu.memory_space<vmem>>, vector<1x32x32xbf16>
    %63 = vector.shape_cast %62 : vector<1x32x32xbf16> to vector<32x32xbf16>
    %cst_17 = arith.constant dense<0.000000e+00> : vector<16x32xf32>
    %64 = tpu.matmul %61, %63, %cst_17 {dimension_numbers = #tpu.dot_dimension_numbers<[1], [0], [0], [1], [0, 0, 1, 1], [], []>} : vector<16x32xbf16>, vector<32x32xbf16>, vector<16x32xf32> -> vector<16x32xf32>
    %c0_18 = arith.constant 0 : index
    %c0_19 = arith.constant 0 : index
    %c0_20 = arith.constant 0 : index
    %65 = vector.load %arg7[%c0_18, %c0_19, %c0_20] : memref<2x1x32xf32, #tpu.memory_space<vmem>>, vector<1x1x32xf32>
    %66 = vector.shape_cast %65 : vector<1x1x32xf32> to vector<1x32xf32>
    %67 = vector.broadcast %66 : vector<1x32xf32> to vector<16x32xf32>
    %68 = arith.addf %64, %67 : vector<16x32xf32>
    %c0_21 = arith.constant 0 : index
    %c0_22 = arith.constant 0 : index
    %c0_23 = arith.constant 0 : index
    %69 = vector.load %arg3[%c0_21, %c0_22, %c0_23] : memref<2x1x32xf32, #tpu.memory_space<vmem>>, vector<1x1x32xf32>
    %70 = vector.shape_cast %69 : vector<1x1x32xf32> to vector<1x32xf32>
    %c0_24 = arith.constant 0 : index
    %c0_25 = arith.constant 0 : index
    %c0_26 = arith.constant 0 : index
    %71 = vector.load %arg4[%c0_24, %c0_25, %c0_26] : memref<2x1x32xf32, #tpu.memory_space<vmem>>, vector<1x1x32xf32>
    %72 = vector.shape_cast %71 : vector<1x1x32xf32> to vector<1x32xf32>
    %cst_27 = arith.constant dense<0.000000e+00> : vector<16xf32>
    %73 = vector.multi_reduction <add>, %9, %cst_27 [1] : vector<16x32xf32> to vector<16xf32>
    %74 = vector.shape_cast %73 : vector<16xf32> to vector<16x1xf32>
    %cst_28 = arith.constant 3.200000e+01 : f32
    %75 = vector.broadcast %cst_28 : f32 to vector<16x1xf32>
    %76 = arith.divf %74, %75 : vector<16x1xf32>
    %77 = arith.mulf %9, %9 : vector<16x32xf32>
    %cst_29 = arith.constant dense<0.000000e+00> : vector<16xf32>
    %78 = vector.multi_reduction <add>, %77, %cst_29 [1] : vector<16x32xf32> to vector<16xf32>
    %79 = vector.shape_cast %78 : vector<16xf32> to vector<16x1xf32>
    %cst_30 = arith.constant 3.200000e+01 : f32
    %80 = vector.broadcast %cst_30 : f32 to vector<16x1xf32>
    %81 = arith.divf %79, %80 : vector<16x1xf32>
    %82 = arith.mulf %76, %76 : vector<16x1xf32>
    %83 = arith.subf %81, %82 : vector<16x1xf32>
    %cst_31 = arith.constant 9.99999974E-6 : f32
    %84 = vector.broadcast %cst_31 : f32 to vector<16x1xf32>
    %85 = arith.addf %83, %84 : vector<16x1xf32>
    %86 = math.rsqrt %85 : vector<16x1xf32>
    %87 = vector.broadcast %76 : vector<16x1xf32> to vector<16x32xf32>
    %88 = arith.subf %9, %87 : vector<16x32xf32>
    %89 = vector.broadcast %86 : vector<16x1xf32> to vector<16x32xf32>
    %90 = arith.mulf %88, %89 : vector<16x32xf32>
    %91 = vector.broadcast %70 : vector<1x32xf32> to vector<16x32xf32>
    %92 = arith.mulf %90, %91 : vector<16x32xf32>
    %93 = vector.broadcast %72 : vector<1x32xf32> to vector<16x32xf32>
    %94 = arith.addf %92, %93 : vector<16x32xf32>
    %95 = arith.addf %94, %68 : vector<16x32xf32>
    %c0_32 = arith.constant 0 : index
    %c0_33 = arith.constant 0 : index
    %c0_34 = arith.constant 0 : index
    %96 = vector.load %arg8[%c0_32, %c0_33, %c0_34] : memref<2x1x32xf32, #tpu.memory_space<vmem>>, vector<1x1x32xf32>
    %97 = vector.shape_cast %96 : vector<1x1x32xf32> to vector<1x32xf32>
    %c0_35 = arith.constant 0 : index
    %c0_36 = arith.constant 0 : index
    %c0_37 = arith.constant 0 : index
    %98 = vector.load %arg9[%c0_35, %c0_36, %c0_37] : memref<2x1x32xf32, #tpu.memory_space<vmem>>, vector<1x1x32xf32>
    %99 = vector.shape_cast %98 : vector<1x1x32xf32> to vector<1x32xf32>
    %cst_38 = arith.constant dense<0.000000e+00> : vector<16xf32>
    %100 = vector.multi_reduction <add>, %95, %cst_38 [1] : vector<16x32xf32> to vector<16xf32>
    %101 = vector.shape_cast %100 : vector<16xf32> to vector<16x1xf32>
    %cst_39 = arith.constant 3.200000e+01 : f32
    %102 = vector.broadcast %cst_39 : f32 to vector<16x1xf32>
    %103 = arith.divf %101, %102 : vector<16x1xf32>
    %104 = arith.mulf %95, %95 : vector<16x32xf32>
    %cst_40 = arith.constant dense<0.000000e+00> : vector<16xf32>
    %105 = vector.multi_reduction <add>, %104, %cst_40 [1] : vector<16x32xf32> to vector<16xf32>
    %106 = vector.shape_cast %105 : vector<16xf32> to vector<16x1xf32>
    %cst_41 = arith.constant 3.200000e+01 : f32
    %107 = vector.broadcast %cst_41 : f32 to vector<16x1xf32>
    %108 = arith.divf %106, %107 : vector<16x1xf32>
    %109 = arith.mulf %103, %103 : vector<16x1xf32>
    %110 = arith.subf %108, %109 : vector<16x1xf32>
    %cst_42 = arith.constant 9.99999974E-6 : f32
    %111 = vector.broadcast %cst_42 : f32 to vector<16x1xf32>
    %112 = arith.addf %110, %111 : vector<16x1xf32>
    %113 = math.rsqrt %112 : vector<16x1xf32>
    %114 = vector.broadcast %103 : vector<16x1xf32> to vector<16x32xf32>
    %115 = arith.subf %95, %114 : vector<16x32xf32>
    %116 = vector.broadcast %113 : vector<16x1xf32> to vector<16x32xf32>
    %117 = arith.mulf %115, %116 : vector<16x32xf32>
    %118 = vector.broadcast %97 : vector<1x32xf32> to vector<16x32xf32>
    %119 = arith.mulf %117, %118 : vector<16x32xf32>
    %120 = vector.broadcast %99 : vector<1x32xf32> to vector<16x32xf32>
    %121 = arith.addf %119, %120 : vector<16x32xf32>
    %c0_43 = arith.constant 0 : index
    %c0_44 = arith.constant 0 : index
    %c0_45 = arith.constant 0 : index
    %122 = vector.load %arg8[%c0_43, %c0_44, %c0_45] : memref<2x1x32xf32, #tpu.memory_space<vmem>>, vector<1x1x32xf32>
    %123 = vector.shape_cast %122 : vector<1x1x32xf32> to vector<1x32xf32>
    %c0_46 = arith.constant 0 : index
    %c0_47 = arith.constant 0 : index
    %c0_48 = arith.constant 0 : index
    %124 = vector.load %arg9[%c0_46, %c0_47, %c0_48] : memref<2x1x32xf32, #tpu.memory_space<vmem>>, vector<1x1x32xf32>
    %125 = vector.shape_cast %124 : vector<1x1x32xf32> to vector<1x32xf32>
    %cst_49 = arith.constant dense<0.000000e+00> : vector<16xf32>
    %126 = vector.multi_reduction <add>, %121, %cst_49 [1] : vector<16x32xf32> to vector<16xf32>
    %127 = vector.shape_cast %126 : vector<16xf32> to vector<16x1xf32>
    %cst_50 = arith.constant 3.200000e+01 : f32
    %128 = vector.broadcast %cst_50 : f32 to vector<16x1xf32>
    %129 = arith.divf %127, %128 : vector<16x1xf32>
    %130 = arith.mulf %121, %121 : vector<16x32xf32>
    %cst_51 = arith.constant dense<0.000000e+00> : vector<16xf32>
    %131 = vector.multi_reduction <add>, %130, %cst_51 [1] : vector<16x32xf32> to vector<16xf32>
    %132 = vector.shape_cast %131 : vector<16xf32> to vector<16x1xf32>
    %cst_52 = arith.constant 3.200000e+01 : f32
    %133 = vector.broadcast %cst_52 : f32 to vector<16x1xf32>
    %134 = arith.divf %132, %133 : vector<16x1xf32>
    %135 = arith.mulf %129, %129 : vector<16x1xf32>
    %136 = arith.subf %134, %135 : vector<16x1xf32>
    %cst_53 = arith.constant 9.99999974E-6 : f32
    %137 = vector.broadcast %cst_53 : f32 to vector<16x1xf32>
    %138 = arith.addf %136, %137 : vector<16x1xf32>
    %139 = math.rsqrt %138 : vector<16x1xf32>
    %140 = vector.broadcast %129 : vector<16x1xf32> to vector<16x32xf32>
    %141 = arith.subf %121, %140 : vector<16x32xf32>
    %142 = vector.broadcast %139 : vector<16x1xf32> to vector<16x32xf32>
    %143 = arith.mulf %141, %142 : vector<16x32xf32>
    %144 = vector.broadcast %123 : vector<1x32xf32> to vector<16x32xf32>
    %145 = arith.mulf %143, %144 : vector<16x32xf32>
    %146 = vector.broadcast %125 : vector<1x32xf32> to vector<16x32xf32>
    %147 = arith.addf %145, %146 : vector<16x32xf32>
    %148 = arith.addf %121, %147 : vector<16x32xf32>
    %149 = arith.truncf %148 : vector<16x32xf32> to vector<16x32xbf16>
    %c1 = arith.constant 1 : index
    %c0_54 = arith.constant 0 : index
    %c0_55 = arith.constant 0 : index
    %150 = vector.load %arg5[%c1, %c0_54, %c0_55] : memref<2x32x96xbf16, #tpu.memory_space<vmem>>, vector<1x32x96xbf16>
    %151 = vector.shape_cast %150 : vector<1x32x96xbf16> to vector<32x96xbf16>
    %cst_56 = arith.constant dense<0.000000e+00> : vector<16x96xf32>
    %152 = tpu.matmul %149, %151, %cst_56 {dimension_numbers = #tpu.dot_dimension_numbers<[1], [0], [0], [1], [0, 0, 1, 1], [], []>} : vector<16x32xbf16>, vector<32x96xbf16>, vector<16x96xf32> -> vector<16x96xf32>
    %153 = vector.shape_cast %152 : vector<16x96xf32> to vector<2x8x96xf32>
    %154 = vector.extract_strided_slice %153 {offsets = [0, 0, 0], sizes = [2, 8, 8], strides = [1, 1, 1]} : vector<2x8x96xf32> to vector<2x8x8xf32>
    %155 = vector.extract_strided_slice %153 {offsets = [0, 0, 8], sizes = [2, 8, 8], strides = [1, 1, 1]} : vector<2x8x96xf32> to vector<2x8x8xf32>
    %156 = vector.extract_strided_slice %153 {offsets = [0, 0, 16], sizes = [2, 8, 8], strides = [1, 1, 1]} : vector<2x8x96xf32> to vector<2x8x8xf32>
    %157 = vector.extract_strided_slice %153 {offsets = [0, 0, 24], sizes = [2, 8, 8], strides = [1, 1, 1]} : vector<2x8x96xf32> to vector<2x8x8xf32>
    %158 = tpu.concatenate %154, %155, %156, %157 in 0 : vector<2x8x8xf32>, vector<2x8x8xf32>, vector<2x8x8xf32>, vector<2x8x8xf32> -> vector<8x8x8xf32>
    %159 = arith.truncf %158 : vector<8x8x8xf32> to vector<8x8x8xbf16>
    %160 = vector.extract_strided_slice %153 {offsets = [0, 0, 32], sizes = [2, 8, 8], strides = [1, 1, 1]} : vector<2x8x96xf32> to vector<2x8x8xf32>
    %161 = vector.extract_strided_slice %153 {offsets = [0, 0, 40], sizes = [2, 8, 8], strides = [1, 1, 1]} : vector<2x8x96xf32> to vector<2x8x8xf32>
    %162 = vector.extract_strided_slice %153 {offsets = [0, 0, 48], sizes = [2, 8, 8], strides = [1, 1, 1]} : vector<2x8x96xf32> to vector<2x8x8xf32>
    %163 = vector.extract_strided_slice %153 {offsets = [0, 0, 56], sizes = [2, 8, 8], strides = [1, 1, 1]} : vector<2x8x96xf32> to vector<2x8x8xf32>
    %164 = tpu.concatenate %160, %161, %162, %163 in 0 : vector<2x8x8xf32>, vector<2x8x8xf32>, vector<2x8x8xf32>, vector<2x8x8xf32> -> vector<8x8x8xf32>
    %165 = arith.truncf %164 : vector<8x8x8xf32> to vector<8x8x8xbf16>
    %166 = vector.extract_strided_slice %153 {offsets = [0, 0, 64], sizes = [2, 8, 8], strides = [1, 1, 1]} : vector<2x8x96xf32> to vector<2x8x8xf32>
    %167 = vector.extract_strided_slice %153 {offsets = [0, 0, 72], sizes = [2, 8, 8], strides = [1, 1, 1]} : vector<2x8x96xf32> to vector<2x8x8xf32>
    %168 = vector.extract_strided_slice %153 {offsets = [0, 0, 80], sizes = [2, 8, 8], strides = [1, 1, 1]} : vector<2x8x96xf32> to vector<2x8x8xf32>
    %169 = vector.extract_strided_slice %153 {offsets = [0, 0, 88], sizes = [2, 8, 8], strides = [1, 1, 1]} : vector<2x8x96xf32> to vector<2x8x8xf32>
    %170 = tpu.concatenate %166, %167, %168, %169 in 0 : vector<2x8x8xf32>, vector<2x8x8xf32>, vector<2x8x8xf32>, vector<2x8x8xf32> -> vector<8x8x8xf32>
    %171 = arith.truncf %170 : vector<8x8x8xf32> to vector<8x8x8xbf16>
    "tpu.trace_start"() <{level = 10 : i32, message = "bqd,bkd->bqk"}> : () -> ()
    %cst_57 = arith.constant dense<0.000000e+00> : vector<8x8x8xf32>
    %172 = tpu.matmul %159, %165, %cst_57 {dimension_numbers = #tpu.dot_dimension_numbers<[2], [2], [1], [1], [0, 0, 0, 1, 1, 1], [0], [0]>} : vector<8x8x8xbf16>, vector<8x8x8xbf16>, vector<8x8x8xf32> -> vector<8x8x8xf32>
    %cst_58 = arith.constant -1.000000e+30 : f32
    "tpu.trace_stop"() : () -> ()
    %173 = vector.shape_cast %12 : vector<8x8xi1> to vector<1x8x8xi1>
    %174 = vector.broadcast %173 : vector<1x8x8xi1> to vector<8x8x8xi1>
    %175 = vector.broadcast %cst_58 : f32 to vector<8x8x8xf32>
    %176 = arith.select %174, %172, %175 : vector<8x8x8xi1>, vector<8x8x8xf32>
    %cst_59 = arith.constant dense<0xFF800000> : vector<8x8xf32>
    %177 = vector.multi_reduction <maximumf>, %176, %cst_59 [2] : vector<8x8x8xf32> to vector<8x8xf32>
    %178 = vector.shape_cast %177 : vector<8x8xf32> to vector<8x8x1xf32>
    %179 = vector.broadcast %178 : vector<8x8x1xf32> to vector<8x8x8xf32>
    %180 = arith.subf %176, %179 : vector<8x8x8xf32>
    %181 = math.exp %180 : vector<8x8x8xf32>
    %cst_60 = arith.constant dense<0.000000e+00> : vector<8x8xf32>
    %182 = vector.multi_reduction <add>, %181, %cst_60 [2] : vector<8x8x8xf32> to vector<8x8xf32>
    %183 = vector.shape_cast %182 : vector<8x8xf32> to vector<8x8x1xf32>
    %184 = vector.broadcast %183 : vector<8x8x1xf32> to vector<8x8x8xf32>
    %185 = arith.divf %181, %184 : vector<8x8x8xf32>
    %186 = arith.truncf %185 : vector<8x8x8xf32> to vector<8x8x8xbf16>
    "tpu.trace_start"() <{level = 10 : i32, message = "bqk,bkd->bqd"}> : () -> ()
    %cst_61 = arith.constant dense<0.000000e+00> : vector<8x8x8xf32>
    %187 = tpu.matmul %186, %171, %cst_61 {dimension_numbers = #tpu.dot_dimension_numbers<[2], [1], [1], [2], [0, 0, 0, 1, 1, 2], [0], [0]>} : vector<8x8x8xbf16>, vector<8x8x8xbf16>, vector<8x8x8xf32> -> vector<8x8x8xf32>
    "tpu.trace_stop"() : () -> ()
    %188 = vector.extract_strided_slice %187 {offsets = [0, 0, 0], sizes = [2, 8, 8], strides = [1, 1, 1]} : vector<8x8x8xf32> to vector<2x8x8xf32>
    %189 = vector.shape_cast %188 : vector<2x8x8xf32> to vector<16x8xf32>
    %190 = vector.extract_strided_slice %187 {offsets = [2, 0, 0], sizes = [2, 8, 8], strides = [1, 1, 1]} : vector<8x8x8xf32> to vector<2x8x8xf32>
    %191 = vector.shape_cast %190 : vector<2x8x8xf32> to vector<16x8xf32>
    %192 = vector.extract_strided_slice %187 {offsets = [4, 0, 0], sizes = [2, 8, 8], strides = [1, 1, 1]} : vector<8x8x8xf32> to vector<2x8x8xf32>
    %193 = vector.shape_cast %192 : vector<2x8x8xf32> to vector<16x8xf32>
    %194 = vector.extract_strided_slice %187 {offsets = [6, 0, 0], sizes = [2, 8, 8], strides = [1, 1, 1]} : vector<8x8x8xf32> to vector<2x8x8xf32>
    %195 = vector.shape_cast %194 : vector<2x8x8xf32> to vector<16x8xf32>
    %196 = tpu.concatenate %189, %191, %193, %195 in 1 : vector<16x8xf32>, vector<16x8xf32>, vector<16x8xf32>, vector<16x8xf32> -> vector<16x32xf32>
    %197 = arith.truncf %196 : vector<16x32xf32> to vector<16x32xbf16>
    %c1_62 = arith.constant 1 : index
    %c0_63 = arith.constant 0 : index
    %c0_64 = arith.constant 0 : index
    %198 = vector.load %arg6[%c1_62, %c0_63, %c0_64] : memref<2x32x32xbf16, #tpu.memory_space<vmem>>, vector<1x32x32xbf16>
    %199 = vector.shape_cast %198 : vector<1x32x32xbf16> to vector<32x32xbf16>
    %cst_65 = arith.constant dense<0.000000e+00> : vector<16x32xf32>
    %200 = tpu.matmul %197, %199, %cst_65 {dimension_numbers = #tpu.dot_dimension_numbers<[1], [0], [0], [1], [0, 0, 1, 1], [], []>} : vector<16x32xbf16>, vector<32x32xbf16>, vector<16x32xf32> -> vector<16x32xf32>
    %c1_66 = arith.constant 1 : index
    %c0_67 = arith.constant 0 : index
    %c0_68 = arith.constant 0 : index
    %201 = vector.load %arg7[%c1_66, %c0_67, %c0_68] : memref<2x1x32xf32, #tpu.memory_space<vmem>>, vector<1x1x32xf32>
    %202 = vector.shape_cast %201 : vector<1x1x32xf32> to vector<1x32xf32>
    %203 = vector.broadcast %202 : vector<1x32xf32> to vector<16x32xf32>
    %204 = arith.addf %200, %203 : vector<16x32xf32>
    %c1_69 = arith.constant 1 : index
    %c0_70 = arith.constant 0 : index
    %c0_71 = arith.constant 0 : index
    %205 = vector.load %arg3[%c1_69, %c0_70, %c0_71] : memref<2x1x32xf32, #tpu.memory_space<vmem>>, vector<1x1x32xf32>
    %206 = vector.shape_cast %205 : vector<1x1x32xf32> to vector<1x32xf32>
    %c1_72 = arith.constant 1 : index
    %c0_73 = arith.constant 0 : index
    %c0_74 = arith.constant 0 : index
    %207 = vector.load %arg4[%c1_72, %c0_73, %c0_74] : memref<2x1x32xf32, #tpu.memory_space<vmem>>, vector<1x1x32xf32>
    %208 = vector.shape_cast %207 : vector<1x1x32xf32> to vector<1x32xf32>
    %cst_75 = arith.constant dense<0.000000e+00> : vector<16xf32>
    %209 = vector.multi_reduction <add>, %148, %cst_75 [1] : vector<16x32xf32> to vector<16xf32>
    %210 = vector.shape_cast %209 : vector<16xf32> to vector<16x1xf32>
    %cst_76 = arith.constant 3.200000e+01 : f32
    %211 = vector.broadcast %cst_76 : f32 to vector<16x1xf32>
    %212 = arith.divf %210, %211 : vector<16x1xf32>
    %213 = arith.mulf %148, %148 : vector<16x32xf32>
    %cst_77 = arith.constant dense<0.000000e+00> : vector<16xf32>
    %214 = vector.multi_reduction <add>, %213, %cst_77 [1] : vector<16x32xf32> to vector<16xf32>
    %215 = vector.shape_cast %214 : vector<16xf32> to vector<16x1xf32>
    %cst_78 = arith.constant 3.200000e+01 : f32
    %216 = vector.broadcast %cst_78 : f32 to vector<16x1xf32>
    %217 = arith.divf %215, %216 : vector<16x1xf32>
    %218 = arith.mulf %212, %212 : vector<16x1xf32>
    %219 = arith.subf %217, %218 : vector<16x1xf32>
    %cst_79 = arith.constant 9.99999974E-6 : f32
    %220 = vector.broadcast %cst_79 : f32 to vector<16x1xf32>
    %221 = arith.addf %219, %220 : vector<16x1xf32>
    %222 = math.rsqrt %221 : vector<16x1xf32>
    %223 = vector.broadcast %212 : vector<16x1xf32> to vector<16x32xf32>
    %224 = arith.subf %148, %223 : vector<16x32xf32>
    %225 = vector.broadcast %222 : vector<16x1xf32> to vector<16x32xf32>
    %226 = arith.mulf %224, %225 : vector<16x32xf32>
    %227 = vector.broadcast %206 : vector<1x32xf32> to vector<16x32xf32>
    %228 = arith.mulf %226, %227 : vector<16x32xf32>
    %229 = vector.broadcast %208 : vector<1x32xf32> to vector<16x32xf32>
    %230 = arith.addf %228, %229 : vector<16x32xf32>
    %231 = arith.addf %230, %204 : vector<16x32xf32>
    %c1_80 = arith.constant 1 : index
    %c0_81 = arith.constant 0 : index
    %c0_82 = arith.constant 0 : index
    %232 = vector.load %arg8[%c1_80, %c0_81, %c0_82] : memref<2x1x32xf32, #tpu.memory_space<vmem>>, vector<1x1x32xf32>
    %233 = vector.shape_cast %232 : vector<1x1x32xf32> to vector<1x32xf32>
    %c1_83 = arith.constant 1 : index
    %c0_84 = arith.constant 0 : index
    %c0_85 = arith.constant 0 : index
    %234 = vector.load %arg9[%c1_83, %c0_84, %c0_85] : memref<2x1x32xf32, #tpu.memory_space<vmem>>, vector<1x1x32xf32>
    %235 = vector.shape_cast %234 : vector<1x1x32xf32> to vector<1x32xf32>
    %cst_86 = arith.constant dense<0.000000e+00> : vector<16xf32>
    %236 = vector.multi_reduction <add>, %231, %cst_86 [1] : vector<16x32xf32> to vector<16xf32>
    %237 = vector.shape_cast %236 : vector<16xf32> to vector<16x1xf32>
    %cst_87 = arith.constant 3.200000e+01 : f32
    %238 = vector.broadcast %cst_87 : f32 to vector<16x1xf32>
    %239 = arith.divf %237, %238 : vector<16x1xf32>
    %240 = arith.mulf %231, %231 : vector<16x32xf32>
    %cst_88 = arith.constant dense<0.000000e+00> : vector<16xf32>
    %241 = vector.multi_reduction <add>, %240, %cst_88 [1] : vector<16x32xf32> to vector<16xf32>
    %242 = vector.shape_cast %241 : vector<16xf32> to vector<16x1xf32>
    %cst_89 = arith.constant 3.200000e+01 : f32
    %243 = vector.broadcast %cst_89 : f32 to vector<16x1xf32>
    %244 = arith.divf %242, %243 : vector<16x1xf32>
    %245 = arith.mulf %239, %239 : vector<16x1xf32>
    %246 = arith.subf %244, %245 : vector<16x1xf32>
    %cst_90 = arith.constant 9.99999974E-6 : f32
    %247 = vector.broadcast %cst_90 : f32 to vector<16x1xf32>
    %248 = arith.addf %246, %247 : vector<16x1xf32>
    %249 = math.rsqrt %248 : vector<16x1xf32>
    %250 = vector.broadcast %239 : vector<16x1xf32> to vector<16x32xf32>
    %251 = arith.subf %231, %250 : vector<16x32xf32>
    %252 = vector.broadcast %249 : vector<16x1xf32> to vector<16x32xf32>
    %253 = arith.mulf %251, %252 : vector<16x32xf32>
    %254 = vector.broadcast %233 : vector<1x32xf32> to vector<16x32xf32>
    %255 = arith.mulf %253, %254 : vector<16x32xf32>
    %256 = vector.broadcast %235 : vector<1x32xf32> to vector<16x32xf32>
    %257 = arith.addf %255, %256 : vector<16x32xf32>
    %c1_91 = arith.constant 1 : index
    %c0_92 = arith.constant 0 : index
    %c0_93 = arith.constant 0 : index
    %258 = vector.load %arg8[%c1_91, %c0_92, %c0_93] : memref<2x1x32xf32, #tpu.memory_space<vmem>>, vector<1x1x32xf32>
    %259 = vector.shape_cast %258 : vector<1x1x32xf32> to vector<1x32xf32>
    %c1_94 = arith.constant 1 : index
    %c0_95 = arith.constant 0 : index
    %c0_96 = arith.constant 0 : index
    %260 = vector.load %arg9[%c1_94, %c0_95, %c0_96] : memref<2x1x32xf32, #tpu.memory_space<vmem>>, vector<1x1x32xf32>
    %261 = vector.shape_cast %260 : vector<1x1x32xf32> to vector<1x32xf32>
    %cst_97 = arith.constant dense<0.000000e+00> : vector<16xf32>
    %262 = vector.multi_reduction <add>, %257, %cst_97 [1] : vector<16x32xf32> to vector<16xf32>
    %263 = vector.shape_cast %262 : vector<16xf32> to vector<16x1xf32>
    %cst_98 = arith.constant 3.200000e+01 : f32
    %264 = vector.broadcast %cst_98 : f32 to vector<16x1xf32>
    %265 = arith.divf %263, %264 : vector<16x1xf32>
    %266 = arith.mulf %257, %257 : vector<16x32xf32>
    %cst_99 = arith.constant dense<0.000000e+00> : vector<16xf32>
    %267 = vector.multi_reduction <add>, %266, %cst_99 [1] : vector<16x32xf32> to vector<16xf32>
    %268 = vector.shape_cast %267 : vector<16xf32> to vector<16x1xf32>
    %cst_100 = arith.constant 3.200000e+01 : f32
    %269 = vector.broadcast %cst_100 : f32 to vector<16x1xf32>
    %270 = arith.divf %268, %269 : vector<16x1xf32>
    %271 = arith.mulf %265, %265 : vector<16x1xf32>
    %272 = arith.subf %270, %271 : vector<16x1xf32>
    %cst_101 = arith.constant 9.99999974E-6 : f32
    %273 = vector.broadcast %cst_101 : f32 to vector<16x1xf32>
    %274 = arith.addf %272, %273 : vector<16x1xf32>
    %275 = math.rsqrt %274 : vector<16x1xf32>
    %276 = vector.broadcast %265 : vector<16x1xf32> to vector<16x32xf32>
    %277 = arith.subf %257, %276 : vector<16x32xf32>
    %278 = vector.broadcast %275 : vector<16x1xf32> to vector<16x32xf32>
    %279 = arith.mulf %277, %278 : vector<16x32xf32>
    %280 = vector.broadcast %259 : vector<1x32xf32> to vector<16x32xf32>
    %281 = arith.mulf %279, %280 : vector<16x32xf32>
    %282 = vector.broadcast %261 : vector<1x32xf32> to vector<16x32xf32>
    %283 = arith.addf %281, %282 : vector<16x32xf32>
    %284 = arith.addf %257, %283 : vector<16x32xf32>
    %c0_102 = arith.constant 0 : index
    %c0_103 = arith.constant 0 : index
    %285 = vector.load %arg10[%c0_102, %c0_103] : memref<1x32xf32, #tpu.memory_space<vmem>>, vector<1x32xf32>
    %c0_104 = arith.constant 0 : index
    %c0_105 = arith.constant 0 : index
    %286 = vector.load %arg11[%c0_104, %c0_105] : memref<1x32xf32, #tpu.memory_space<vmem>>, vector<1x32xf32>
    %cst_106 = arith.constant dense<0.000000e+00> : vector<16xf32>
    %287 = vector.multi_reduction <add>, %284, %cst_106 [1] : vector<16x32xf32> to vector<16xf32>
    %288 = vector.shape_cast %287 : vector<16xf32> to vector<16x1xf32>
    %cst_107 = arith.constant 3.200000e+01 : f32
    %289 = vector.broadcast %cst_107 : f32 to vector<16x1xf32>
    %290 = arith.divf %288, %289 : vector<16x1xf32>
    %291 = arith.mulf %284, %284 : vector<16x32xf32>
    %cst_108 = arith.constant dense<0.000000e+00> : vector<16xf32>
    %292 = vector.multi_reduction <add>, %291, %cst_108 [1] : vector<16x32xf32> to vector<16xf32>
    %293 = vector.shape_cast %292 : vector<16xf32> to vector<16x1xf32>
    %cst_109 = arith.constant 3.200000e+01 : f32
    %294 = vector.broadcast %cst_109 : f32 to vector<16x1xf32>
    %295 = arith.divf %293, %294 : vector<16x1xf32>
    %296 = arith.mulf %290, %290 : vector<16x1xf32>
    %297 = arith.subf %295, %296 : vector<16x1xf32>
    %cst_110 = arith.constant 9.99999974E-6 : f32
    %298 = vector.broadcast %cst_110 : f32 to vector<16x1xf32>
    %299 = arith.addf %297, %298 : vector<16x1xf32>
    %300 = math.rsqrt %299 : vector<16x1xf32>
    %301 = vector.broadcast %290 : vector<16x1xf32> to vector<16x32xf32>
    %302 = arith.subf %284, %301 : vector<16x32xf32>
    %303 = vector.broadcast %300 : vector<16x1xf32> to vector<16x32xf32>
    %304 = arith.mulf %302, %303 : vector<16x32xf32>
    %305 = vector.broadcast %285 : vector<1x32xf32> to vector<16x32xf32>
    %306 = arith.mulf %304, %305 : vector<16x32xf32>
    %307 = vector.broadcast %286 : vector<1x32xf32> to vector<16x32xf32>
    %308 = arith.addf %306, %307 : vector<16x32xf32>
    %309 = arith.truncf %308 : vector<16x32xf32> to vector<16x32xbf16>
    %c0_111 = arith.constant 0 : index
    %c0_112 = arith.constant 0 : index
    %310 = vector.load %arg12[%c0_111, %c0_112] : memref<32x128xbf16, #tpu.memory_space<vmem>>, vector<32x128xbf16>
    %cst_113 = arith.constant dense<0.000000e+00> : vector<16x128xf32>
    %311 = tpu.matmul %309, %310, %cst_113 {dimension_numbers = #tpu.dot_dimension_numbers<[1], [0], [0], [1], [0, 0, 1, 1], [], []>} : vector<16x32xbf16>, vector<32x128xbf16>, vector<16x128xf32> -> vector<16x128xf32>
    %c0_114 = arith.constant 0 : index
    %c0_115 = arith.constant 0 : index
    %312 = vector.load %arg13[%c0_114, %c0_115] : memref<1x128xf32, #tpu.memory_space<vmem>>, vector<1x128xf32>
    %313 = vector.broadcast %312 : vector<1x128xf32> to vector<16x128xf32>
    %314 = arith.addf %311, %313 : vector<16x128xf32>
    %c0_116 = arith.constant 0 : index
    %c0_117 = arith.constant 0 : index
    %315 = vector.load %arg14[%c0_116, %c0_117] : memref<16x128xf32, #tpu.memory_space<vmem>>, vector<16x128xf32>
    tpu.vector_store %arg14[%c0_116, %c0_117], %314 {strides = array<i32>} : memref<16x128xf32, #tpu.memory_space<vmem>>, vector<16x128xf32>,
    return
  }
}

</mosaic_0001>

<bundles_post_ra>
// kernel: tpu_custom_call.1
= control target key start
LH: loop header
LB: loop body
LE: loop exit
PB: predicated region body
PF: predicated region fallthrough
CT: control target
= control target key end

     0   :  { %v3352_v2 = vmov 0   ;;  %v3353_v7 = vmov 0.0   ;;  %s4068_s0 = inlined_call_operand.vmem [shape: s32[16,1], index: 0, kind: input, shape index: {}]   ;;  %s4069_s1 = inlined_call_operand.vmem [shape: f32[128,32], index: 1, kind: input, shape index: {}]   ;;  %s4070_s2 = inlined_call_operand.vmem [shape: f32[16,32], index: 2, kind: input, shape index: {}]   ;;  %s4071_s3 = inlined_call_operand.vmem [shape: f32[2,1,32], index: 3, kind: input, shape index: {}]   ;;  %s4072_s4 = inlined_call_operand.vmem [shape: f32[2,1,32], index: 4, kind: input, shape index: {}]   ;;  %s4073_s5 = inlined_call_operand.vmem [shape: bf16[2,32,96], index: 5, kind: input, shape index: {}]   ;;  %s4074_s6 = inlined_call_operand.vmem [shape: bf16[2,32,32], index: 6, kind: input, shape index: {}]   ;;  %s4075_s7 = inlined_call_operand.vmem [shape: f32[2,1,32], index: 7, kind: input, shape index: {}]   ;;  %s4076_s8 = inlined_call_operand.vmem [shape: f32[2,1,32], index: 8, kind: input, shape index: {}]   ;;  %s4077_s9 = inlined_call_operand.vmem [shape: f32[2,1,32], index: 9, kind: input, shape index: {}]   ;;  %s4078_s10 = inlined_call_operand.vmem [shape: f32[1,32], index: 10, kind: input, shape index: {}]   ;;  %s4079_s11 = inlined_call_operand.vmem [shape: f32[1,32], index: 11, kind: input, shape index: {}]   ;;  %s4080_s12 = inlined_call_operand.vmem [shape: bf16[32,128], index: 12, kind: input, shape index: {}]   ;;  %s4081_s13 = inlined_call_operand.vmem [shape: f32[1,128], index: 13, kind: input, shape index: {}]   ;;  %s4082_s14 = inlined_call_operand.hbm [shape: f32[16,128], index: 14, kind: output, shape index: {}]  }
   0x1   :  { %v49_v0 = vld [vmem:[%s4068_s0] sm:$0xff]  ;;  %v80_v1 = vld [vmem:[%s4069_s1 + $0x78] sm:$0xff]  ;;  %3167 = vset.pattern.permute.xlu0 %v3352_v2  ;;  %v79_v3 = vld [vmem:[%s4069_s1 + $0x70] sm:$0xff]  ;;  %2921 = vmatprep.subr.bf16.mxu1 %v3353_v7 }
   0x2   :  { %2886 = vmatprep.subr.mxu0 %v80_v1  ;;  %54 = vperm.xlu0 %3167, %v49_v0   ;;  %v78_v4 = vld [vmem:[%s4069_s1 + $0x68] sm:$0xff]  ;;  %v77_v6 = vld [vmem:[%s4069_s1 + $0x60] sm:$0xff]  ;;  %v76_v8 = vld [vmem:[%s4069_s1 + $0x58] sm:$0xff] }
   0x3   :  { %2887 = vmatpush3.msra.mxu0 %v80_v1  ;;  %v50_v5 = vld [vmem:[%s4068_s0 + $0x8] sm:$0xff]  ;;  %v75_v9 = vld [vmem:[%s4069_s1 + $0x50] sm:$0xff]  ;;  %v73_v11 = vld [vmem:[%s4069_s1 + $0x40] sm:$0xff] }
   0x4   :  { %2888 = vmatprep.subr.mxu0 %v79_v3  ;;  %v74_v10 = vld [vmem:[%s4069_s1 + $0x48] sm:$0xff] }
   0x5   :  { %2889 = vmatpush3.msra.mxu0 %v79_v3 }
   0x6   :  { %2890 = vmatprep.subr.mxu0 %v78_v4  ;;  %57 = vperm.xlu0 %3167, %v50_v5  }
   0x7   :  { %2891 = vmatpush3.msra.mxu0 %v78_v4 }
   0x8   :  { %2892 = vmatprep.subr.mxu0 %v77_v6 }
   0x9   :  { %2893 = vmatpush3.msra.mxu0 %v77_v6 }
   0xa   :  { %2894 = vmatprep.subr.mxu0 %v76_v8 }
   0xb   :  { %2895 = vmatpush3.msra.mxu0 %v76_v8 }
   0xc   :  { %2896 = vmatprep.subr.mxu0 %v75_v9 }
   0xd   :  { %2897 = vmatpush3.msra.mxu0 %v75_v9 }
   0xe   :  { %2898 = vmatprep.subr.mxu0 %v74_v10 }
   0xf   :  { %19 = vsyncpa [#allocation3], 0  ;;  %2899 = vmatpush3.msra.mxu0 %v74_v10  ;;  %v72_v12 = vld [vmem:[%s4069_s1 + $0x38] sm:$0xff]  ;;  %v71_v13 = vld [vmem:[%s4069_s1 + $0x30] sm:$0xff]  ;;  %v51_v20 = vlaneseq  ;;  %v3354_v23 = vmov 1.0   ;;  %vm3355_vm2 = vmmov 0  }
  0x10   :  { %2900 = vmatprep.subr.mxu0 %v73_v11  ;;  %v70_v14 = vld [vmem:[%s4069_s1 + $0x28] sm:$0xff]  ;;  %v69_v15 = vld [vmem:[%s4069_s1 + $0x20] sm:$0xff]  ;;  %v68_v16 = vld [vmem:[%s4069_s1 + $0x18] sm:$0xff]  ;;  %2925 = vmatprep.mubr.msk.bf16.mxu1 %vm3355_vm2, %v3353_v7  ;;  %vm178_vm3 = vcmask 261120   ;;  %s3357_s22 = smov 120   ;;  %s3358_s23 = smov 112  }
  0x11   :  { %2901 = vmatpush3.msra.mxu0 %v73_v11  ;;  %v67_v17 = vld [vmem:[%s4069_s1 + $0x10] sm:$0xff]  ;;  %v66_v18 = vld [vmem:[%s4069_s1 + $0x8] sm:$0xff]  ;;  %v65_v19 = vld [vmem:[%s4069_s1] sm:$0xff]  ;;  %v3498_v21 = vand.u32 127, %v51_v20  ;;  %s3359_s24 = smov 96   ;;  %vm254_vm4 = vcmask 64512  }
  0x12   :  { %2902 = vmatprep.subr.mxu0 %v72_v12  ;;  %v3228_v25 = vld [vmem:[%s4073_s5 + $0x8] sm:$0xff]   ;;  %v3229_v26 = vld [vmem:[%s4073_s5] sm:$0xff]   ;;  %s3360_s25 = smov 64   ;;  %vm755_vm5 = vcmask 1043456   ;;  %s3361_s26 = smov 8   ;;  %vm1161_vm7 = vcmask 130048  }
  0x13   :  { %2903 = vmatpush3.msra.mxu0 %v72_v12  ;;  %2922 = vmatpush3.bf16.msra.mxu1 %v3228_v25  ;;  %v82_v27 = vld [vmem:[%s4070_s2 + $0x8] sm:$0xff]  ;;  %v81_v29 = vld [vmem:[%s4070_s2] sm:$0xff]  ;;  %s3356_s2 = smov 104   ;;  %s3362_s30 = smov 16   ;;  %vm1164_vm8 = vcmask 195584  }
  0x14   :  { %2904 = vmatprep.subr.mxu0 %v71_v13  ;;  %2923 = vmatprep.subr.bf16.mxu1 %v3353_v7  ;;  %s3363_s1 = smov 24  }
  0x15   :  { %2905 = vmatpush3.msra.mxu0 %v71_v13  ;;  %v159_v13 = vshrl.u32 %v51_v20, 7 }
  0x16   :  { %2906 = vmatprep.subr.mxu0 %v70_v14 }
  0x17   :  { %2907 = vmatpush3.msra.mxu0 %v70_v14  ;;  %2924 = vmatpush3.bf16.msra.mxu1 %v3229_v26  ;;  %vm3612_vm6 = vcmp.le.s32.totalorder %v3498_v21, %v159_v13 }
  0x18   :  { %2908 = vmatprep.subr.mxu0 %v69_v15  ;;  %2929 = vmatprep.subr.bf16.mxu1 %v3353_v7 }
  0x19   :  { %2909 = vmatpush3.msra.mxu0 %v69_v15 }
  0x1a   :  { %2910 = vmatprep.subr.mxu0 %v68_v16 }
  0x1b   :  { %2911 = vmatpush3.msra.mxu0 %v68_v16 }
  0x1c   :  { %2912 = vmatprep.subr.mxu0 %v67_v17 }
  0x1d   :  { %2913 = vmatpush3.msra.mxu0 %v67_v17 }
  0x1e   :  { %2914 = vmatprep.subr.mxu0 %v66_v18 }
  0x1f   :  { %2915 = vmatpush3.msra.mxu0 %v66_v18 }
  0x20   :  { %2916 = vmatprep.subr.mxu0 %v65_v19 }
  0x21   :  { %2917 = vmatpush3.msra.mxu0 %v65_v19 }
  0x22   :  { %2947 = vmatprep.subr.bf16.mxu0 %v3353_v7 }
  0x7d   :  { %v55_v22 = vpop.permute.xlu0 %54 }
  0x7e   :  { %vm59_vm0 = vcmp.eq.s32.totalorder %v3498_v21, %v55_v22 }
  0x7f   :  { %2918 = vmatprep.mubr.msk.f32.mxu0 %vm59_vm0, %v3354_v23 }
  0x81   :  { %v58_v24 = vpop.permute.xlu0 %57 }
  0x82   :  { %vm60_vm1 = vcmp.eq.s32.totalorder %v3498_v21, %v58_v24 }
  0x83   :  { %2919 = vmatmul.mubr.msk.f32.vlgmr.msra.gmra.mxu0 %vm60_vm1, %v3354_v23 }
  0x84   :  { %2949 = vmatprep.mubr.msk.bf16.mxu0 %vm3355_vm2, %v3353_v7 }
 0x143   :  { %v2920_v28 = vpop.f32.mrf.mxu0 }
 0x144   :  { %v3520_v31 = vadd.f32 %v2920_v28, %v82_v27 }
 0x145   :  { %v149_v30 = vpop.f32.mrf.mxu0 }
 0x146   :  { %v3522_v32 = vadd.f32 %v149_v30, %v81_v29 }
 0x148   :  { %v161_v33 = vpack.c.bf16 %v3520_v31, %v3522_v32 }
 0x14a   :  { %2926 = vmatmul.mubr.msk.bf16.vlgmr.msra.gmra.mxu1 %vm178_vm3, %v161_v33 }
 0x14b   :  { %2931 = vmatprep.mubr.msk.bf16.mxu1 %vm3355_vm2, %v3353_v7 }
 0x20a   :  { %v216_v34 = vpop.f32.mrf.mxu1 }
 0x20b   :  { %v243_v40 = vpack.c.bf16 %v216_v34, %v216_v34 }
 0x20c   :  { %v2927_v35 = vpop.f32.mrf.mxu1 }
 0x20e   :  { %v219_v36 = vpop.f32.mrf.mxu1 }
 0x20f   :  { %v3178_v37 = vpack.i.bf16 %v219_v36, %v216_v34  ;;  %v244_v39 = vpack.c.bf16 %v219_v36, %v219_v36 }
 0x210   :  { %v2928_v38 = vpop.f32.mrf.mxu1 }
 0x211   :  { %3179 = vrot.lane.b32.xlu0 %v3178_v37, %s3356_s2  ;;  %3169 = vrot.lane.b32.xlu1 %v3178_v37, %s3357_s22 }
 0x215   :  { %3174 = vrot.lane.b32.xlu1 %v3178_v37, %s3358_s23  ;;  %302 = vrot.lane.b32.xlu0 %v244_v39, %s3359_s24 }
 0x219   :  { %252 = vrot.lane.b32.xlu1 %v243_v40, %s3359_s24 }
 0x283   :  { %v3170_v41 = vpop.permute.xlu1 %3169  ;;  %v3180_v46 = vpop.permute.xlu0 %3179 }
 0x284   :  { %v3172_v42 = vunpack.i.h.bf16 %v3170_v41  ;;  %v3171_v43 = vunpack.i.l.bf16 %v3170_v41  ;;  %v3182_v50 = vunpack.i.h.bf16 %v3180_v46  ;;  %v3181_v51 = vunpack.i.l.bf16 %v3180_v46 }
 0x286   :  { %v3534_v44 = vpack.c.bf16 %v3171_v43, %v3171_v43  ;;  %v3536_v45 = vpack.c.bf16 %v3172_v42, %v3172_v42  ;;  %v3551_v56 = vpack.c.bf16 %v3181_v51, %v3181_v51  ;;  %v3553_v57 = vpack.c.bf16 %v3182_v50, %v3182_v50 }
 0x287   :  { %v3175_v47 = vpop.permute.xlu1 %3174  ;;  %v303_v58 = vpop.permute.xlu0 %302 }
 0x288   :  { %v3177_v48 = vunpack.i.h.bf16 %v3175_v47  ;;  %v3176_v49 = vunpack.i.l.bf16 %v3175_v47  ;;  %351 = vrot.lane.b32.xlu1 %v3534_v44, %s3359_s24  ;;  %400 = vrot.lane.b32.xlu0 %v3536_v45, %s3359_s24  ;;  %v308_v59 = vsel %vm254_vm4, %v303_v58, 0 }
 0x28a   :  { %v3542_v52 = vpack.c.bf16 %v3176_v49, %v3176_v49  ;;  %v3544_v53 = vpack.c.bf16 %v3177_v48, %v3177_v48 }
 0x28b   :  { %v253_v54 = vpop.permute.xlu1 %252 }
 0x28c   :  { %v259_v55 = vsel %vm254_vm4, %v253_v54, 0  ;;  %449 = vrot.lane.b32.xlu1 %v3542_v52, %s3359_s24  ;;  %498 = vrot.lane.b32.xlu0 %v3544_v53, %s3359_s24 }
 0x28d   :  { %2930 = vmatpush3.bf16.xpose.msra.mxu1 %v259_v55 }
 0x28e   :  { %2935 = vmatprep.subr.bf16.mxu1 %v3353_v7 }
 0x290   :  { %547 = vrot.lane.b32.xlu1 %v3551_v56, %s3359_s24  ;;  %596 = vrot.lane.b32.xlu0 %v3553_v57, %s3359_s24 }
 0x294   :  { %2932 = vmatmul.mubr.msk.bf16.vlgmr.msra.gmra.mxu1 %vm254_vm4, %v243_v40  ;;  %799 = vrot.lane.b32.xlu1 %v244_v39, %s3360_s25 }
 0x295   :  { %750 = vrot.lane.b32.xlu0 %v243_v40, %s3360_s25  ;;  %2936 = vmatpush3.bf16.xpose.msra.mxu1 %v308_v59 }
 0x296   :  { %2937 = vmatprep.mubr.msk.bf16.mxu1 %vm3355_vm2, %v3353_v7  ;;  %2941 = vmatprep.subr.bf16.mxu1 %v3353_v7 }
 0x29c   :  { %2938 = vmatmul.mubr.msk.bf16.vlgmr.msra.gmra.mxu1 %vm254_vm4, %v244_v39 }
 0x29d   :  { %2943 = vmatprep.mubr.msk.bf16.mxu1 %vm3355_vm2, %v3353_v7 }
 0x2fa   :  { %v352_v60 = vpop.permute.xlu1 %351  ;;  %v401_v61 = vpop.permute.xlu0 %400 }
 0x2fb   :  { %v357_v62 = vsel %vm254_vm4, %v352_v60, 0  ;;  %v406_v63 = vsel %vm254_vm4, %v401_v61, 0 }
 0x2fc   :  { %2942 = vmatpush3.bf16.xpose.msra.mxu1 %v357_v62  ;;  %2948 = vmatpush3.bf16.xpose.msra.mxu0 %v406_v63 }
 0x2fd   :  { %2953 = vmatprep.subr.bf16.mxu1 %v3353_v7  ;;  %2959 = vmatprep.subr.bf16.mxu0 %v3353_v7 }
 0x2fe   :  { %v450_v0 = vpop.permute.xlu1 %449  ;;  %v499_v1 = vpop.permute.xlu0 %498 }
 0x2ff   :  { %v455_v2 = vsel %vm254_vm4, %v450_v0, 0  ;;  %v504_v3 = vsel %vm254_vm4, %v499_v1, 0 }
 0x302   :  { %v548_v4 = vpop.permute.xlu1 %547  ;;  %v597_v5 = vpop.permute.xlu0 %596 }
 0x303   :  { %2944 = vmatmul.mubr.msk.bf16.vlgmr.msra.gmra.mxu1 %vm254_vm4, %v3534_v44  ;;  %2950 = vmatmul.mubr.msk.bf16.vlgmr.msra.gmra.mxu0 %vm254_vm4, %v3536_v45  ;;  %v553_v6 = vsel %vm254_vm4, %v548_v4, 0  ;;  %v602_v8 = vsel %vm254_vm4, %v597_v5, 0 }
 0x304   :  { %2954 = vmatpush3.bf16.xpose.msra.mxu1 %v455_v2  ;;  %2960 = vmatpush3.bf16.xpose.msra.mxu0 %v504_v3 }
 0x305   :  { %2955 = vmatprep.mubr.msk.bf16.mxu1 %vm3355_vm2, %v3353_v7  ;;  %2961 = vmatprep.mubr.msk.bf16.mxu0 %vm3355_vm2, %v3353_v7 }
 0x306   :  { %2965 = vmatprep.subr.bf16.mxu1 %v3353_v7  ;;  %2971 = vmatprep.subr.bf16.mxu0 %v3353_v7  ;;  %v800_v9 = vpop.permute.xlu1 %799 }
 0x307   :  { %v751_v10 = vpop.permute.xlu0 %750  ;;  %v805_v11 = vsel %vm755_vm5, %v800_v9, 0 }
 0x308   :  { %v757_v12 = vsel %vm755_vm5, %v751_v10, 0 }
 0x30b   :  { %2956 = vmatmul.mubr.msk.bf16.vlgmr.msra.gmra.mxu1 %vm254_vm4, %v3542_v52  ;;  %2962 = vmatmul.mubr.msk.bf16.vlgmr.msra.gmra.mxu0 %vm254_vm4, %v3544_v53 }
 0x30c   :  { %2966 = vmatpush3.bf16.xpose.msra.mxu1 %v553_v6  ;;  %2972 = vmatpush3.bf16.xpose.msra.mxu0 %v602_v8 }
 0x30d   :  { %2967 = vmatprep.mubr.msk.bf16.mxu1 %vm3355_vm2, %v3353_v7  ;;  %2973 = vmatprep.mubr.msk.bf16.mxu0 %vm3355_vm2, %v3353_v7 }
 0x30e   :  { %2977 = vmatprep.subr.bf16.mxu1 %v3353_v7  ;;  %2983 = vmatprep.subr.bf16.mxu0 %v3353_v7 }
 0x313   :  { %2968 = vmatmul.mubr.msk.bf16.vlgmr.msra.gmra.mxu1 %vm254_vm4, %v3551_v56  ;;  %2974 = vmatmul.mubr.msk.bf16.vlgmr.msra.gmra.mxu0 %vm254_vm4, %v3553_v57 }
 0x314   :  { %2978 = vmatpush3.bf16.msra.mxu1 %v757_v12  ;;  %2984 = vmatpush3.bf16.msra.mxu0 %v805_v11 }
 0x315   :  { %2979 = vmatprep.mubr.msk.bf16.mxu1 %vm3355_vm2, %v3353_v7  ;;  %2985 = vmatprep.mubr.msk.bf16.mxu0 %vm3355_vm2, %v3353_v7 }
 0x316   :  { %2989 = vmatprep.subr.bf16.mxu1 %v3353_v7  ;;  %2995 = vmatprep.subr.bf16.mxu0 %v3353_v7 }
 0x354   :  { %v295_v15 = vpop.f32.mrf.mxu1 }
 0x355   :  { %v646_v16 = vsel %vm3612_vm6, %v295_v15, -1e+30 }
 0x356   :  { %v2933_v17 = vpop.f32.mrf.mxu1  ;;  %v654_v18 = vsel %vm254_vm4, %v646_v16, -inf }
 0x357   :  { %655 = vmax.xlane.f32.xlu1 %v654_v18 }
 0x358   :  { %v298_v19 = vpop.f32.mrf.mxu1 }
 0x35a   :  { %v2934_v22 = vpop.f32.mrf.mxu1 }
 0x35c   :  { %v344_v23 = vpop.f32.mrf.mxu1 }
 0x35d   :  { %v647_v24 = vsel %vm3612_vm6, %v344_v23, -1e+30 }
 0x35e   :  { %v2939_v20 = vpop.f32.mrf.mxu1  ;;  %v657_v21 = vsel %vm254_vm4, %v647_v24, -inf }
 0x35f   :  { %658 = vmax.xlane.f32.xlu0 %v657_v21 }
 0x360   :  { %v347_v25 = vpop.f32.mrf.mxu1 }
 0x362   :  { %v2940_v26 = vpop.f32.mrf.mxu1 }
 0x3c3   :  { %v393_v27 = vpop.f32.mrf.mxu1  ;;  %v442_v28 = vpop.f32.mrf.mxu0 }
 0x3c4   :  { %v648_v29 = vsel %vm3612_vm6, %v393_v27, -1e+30  ;;  %v649_v30 = vsel %vm3612_vm6, %v442_v28, -1e+30 }
 0x3c5   :  { %v2945_v33 = vpop.f32.mrf.mxu1  ;;  %v2951_v34 = vpop.f32.mrf.mxu0  ;;  %v663_v35 = vsel %vm254_vm4, %v649_v30, -inf  ;;  %v660_v36 = vsel %vm254_vm4, %v648_v29, -inf }
 0x3c6   :  { %664 = vmax.xlane.f32.xlu1 %v663_v35  ;;  %661 = vmax.xlane.f32.xlu0 %v660_v36 }
 0x3c7   :  { %v396_v37 = vpop.f32.mrf.mxu1  ;;  %v445_v38 = vpop.f32.mrf.mxu0 }
 0x3c9   :  { %v2946_v39 = vpop.f32.mrf.mxu1  ;;  %v2952_v40 = vpop.f32.mrf.mxu0 }
 0x3cb   :  { %v491_v41 = vpop.f32.mrf.mxu1  ;;  %v540_v42 = vpop.f32.mrf.mxu0 }
 0x3cc   :  { %v3630_v43 = vsel %vm3612_vm6, %v491_v41, -1e+30  ;;  %v651_v46 = vsel %vm3612_vm6, %v540_v42, -1e+30 }
 0x3cd   :  { %v2957_v47 = vpop.f32.mrf.mxu1  ;;  %v2963_v48 = vpop.f32.mrf.mxu0  ;;  %v669_v49 = vsel %vm254_vm4, %v651_v46, -inf  ;;  %v666_v50 = vsel %vm254_vm4, %v3630_v43, -inf }
 0x3ce   :  { %670 = vmax.xlane.f32.xlu1 %v669_v49  ;;  %667 = vmax.xlane.f32.xlu0 %v666_v50 }
 0x3cf   :  { %v494_v51 = vpop.f32.mrf.mxu1  ;;  %v543_v54 = vpop.f32.mrf.mxu0 }
 0x3d1   :  { %v2958_v55 = vpop.f32.mrf.mxu1  ;;  %v2964_v58 = vpop.f32.mrf.mxu0 }
 0x3d3   :  { %v589_v59 = vpop.f32.mrf.mxu1  ;;  %v638_v60 = vpop.f32.mrf.mxu0 }
 0x3d4   :  { %v3639_v61 = vsel %vm3612_vm6, %v589_v59, -1e+30  ;;  %v653_v62 = vsel %vm3612_vm6, %v638_v60, -1e+30 }
 0x3d5   :  { %v2969_v63 = vpop.f32.mrf.mxu1  ;;  %v2975_v0 = vpop.f32.mrf.mxu0  ;;  %v675_v1 = vsel %vm254_vm4, %v653_v62, -inf  ;;  %v672_v2 = vsel %vm254_vm4, %v3639_v61, -inf }
 0x3d6   :  { %676 = vmax.xlane.f32.xlu1 %v675_v1  ;;  %673 = vmax.xlane.f32.xlu0 %v672_v2 }
 0x3d7   :  { %v592_v3 = vpop.f32.mrf.mxu1  ;;  %v641_v4 = vpop.f32.mrf.mxu0 }
 0x3d9   :  { %v2970_v5 = vpop.f32.mrf.mxu1  ;;  %v2976_v6 = vpop.f32.mrf.mxu0 }
 0x3e0   :  { %v656_v8 = vpop.xlane.xlu1 %655 }
 0x3e1   :  { %v678_v10 = vsub.f32 %v646_v16, %v656_v8 }
 0x3e3   :  { %v686_v12 = vmul.f32 1.442695, %v678_v10 }
 0x3e5   :  { %3238 = vpow2.f32 %v686_v12 }
 0x3e7   :  { %847 = vrot.lane.b32.xlu1 %v3534_v44, %s3360_s25 }
 0x3e8   :  { %v659_v9 = vpop.xlane.xlu0 %658 }
 0x3e9   :  { %v679_v11 = vsub.f32 %v647_v24, %v659_v9 }
 0x3eb   :  { %v688_v13 = vmul.f32 1.442695, %v679_v11 }
 0x3ec   :  { %895 = vrot.lane.b32.xlu0 %v3536_v45, %s3360_s25 }
 0x3ed   :  { %3240 = vpow2.f32 %v688_v13 }
 0x3f2   :  { %v3239_v15 = vpop.eup %3238 }
 0x3f3   :  { %v702_v19 = vsel %vm254_vm4, %v3239_v15, 0.0 }
 0x3fa   :  { %v3241_v17 = vpop.eup %3240 }
 0x3fb   :  { %v705_v18 = vsel %vm254_vm4, %v3241_v17, 0.0 }
 0x40b   :  { %706 = vadd.xlane.f32.xlu1 %v705_v18  ;;  %703 = vadd.xlane.f32.xlu0 %v702_v19 }
 0x41c   :  { %943 = vrot.lane.b32.xlu1 %v3542_v52, %s3360_s25 }
 0x44f   :  { %v665_v44 = vpop.xlane.xlu1 %664  ;;  %v662_v45 = vpop.xlane.xlu0 %661 }
 0x450   :  { %v681_v22 = vsub.f32 %v649_v30, %v665_v44  ;;  %v680_v16 = vsub.f32 %v648_v29, %v662_v45 }
 0x452   :  { %v692_v23 = vmul.f32 1.442695, %v681_v22  ;;  %v690_v24 = vmul.f32 1.442695, %v680_v16 }
 0x454   :  { %3242 = vpow2.f32 %v692_v23 }
 0x455   :  { %3244 = vpow2.f32 %v690_v24 }
 0x457   :  { %v671_v20 = vpop.xlane.xlu1 %670  ;;  %v668_v38 = vpop.xlane.xlu0 %667 }
 0x458   :  { %v683_v21 = vsub.f32 %v651_v46, %v671_v20  ;;  %v682_v39 = vsub.f32 %v3630_v43, %v668_v38 }
 0x45a   :  { %v696_v25 = vmul.f32 1.442695, %v683_v21  ;;  %v694_v41 = vmul.f32 1.442695, %v682_v39 }
 0x45c   :  { %3246 = vpow2.f32 %v696_v25 }
 0x45f   :  { %v677_v26 = vpop.xlane.xlu1 %676  ;;  %v674_v40 = vpop.xlane.xlu0 %673 }
 0x460   :  { %v685_v27 = vsub.f32 %v653_v62, %v677_v26  ;;  %v684_v42 = vsub.f32 %v3639_v61, %v674_v40 }
 0x461   :  { %v3243_v28 = vpop.eup %3242 }
 0x462   :  { %v3654_v33 = vpop.eup %3244  ;;  %v700_v34 = vmul.f32 1.442695, %v685_v27  ;;  %v711_v52 = vsel %vm254_vm4, %v3243_v28, 0.0  ;;  %v698_v46 = vmul.f32 1.442695, %v684_v42 }
 0x463   :  { %712 = vadd.xlane.f32.xlu1 %v711_v52  ;;  %v708_v29 = vsel %vm254_vm4, %v3654_v33, 0.0  ;;  %v848_v47 = vpop.permute.xlu1 %847  ;;  %v896_v48 = vpop.permute.xlu0 %895 }
 0x464   :  { %3248 = vpow2.f32 %v700_v34  ;;  %709 = vadd.xlane.f32.xlu0 %v708_v29  ;;  %v901_v62 = vsel %vm755_vm5, %v896_v48, 0  ;;  %v853_v63 = vsel %vm755_vm5, %v848_v47, 0 }
 0x465   :  { %3250 = vpow2.f32 %v694_v41 }
 0x466   :  { %3252 = vpow2.f32 %v698_v46 }
 0x469   :  { %v3659_v30 = vpop.eup %3246 }
 0x46a   :  { %v717_v35 = vsel %vm254_vm4, %v3659_v30, 0.0 }
 0x46b   :  { %718 = vadd.xlane.f32.xlu1 %v717_v35 }
 0x471   :  { %v3663_v36 = vpop.eup %3248 }
 0x472   :  { %v723_v37 = vsel %vm254_vm4, %v3663_v36, 0.0  ;;  %v3673_v51 = vpop.eup %3250 }
 0x473   :  { %724 = vadd.xlane.f32.xlu1 %v723_v37  ;;  %v3677_v43 = vpop.eup %3252 }
 0x47a   :  { %991 = vrot.lane.b32.xlu0 %v3544_v53, %s3360_s25  ;;  %v714_v53 = vsel %vm254_vm4, %v3673_v51, 0.0 }
 0x484   :  { %1039 = vrot.lane.b32.xlu1 %v3551_v56, %s3360_s25  ;;  %v720_v56 = vsel %vm254_vm4, %v3677_v43, 0.0 }
 0x494   :  { %v707_v49 = vpop.xlane.xlu1 %706  ;;  %v704_v50 = vpop.xlane.xlu0 %703 }
 0x495   :  { %3254 = vrcp.f32 %v707_v49 }
 0x496   :  { %3256 = vrcp.f32 %v704_v50 }
 0x498   :  { %v944_v0 = vpop.permute.xlu1 %943 }
 0x499   :  { %715 = vadd.xlane.f32.xlu0 %v714_v53 }
 0x49d   :  { %721 = vadd.xlane.f32.xlu0 %v720_v56 }
 0x4a2   :  { %v3255_v54 = vpop.eup %3254 }
 0x4a3   :  { %v3257_v55 = vpop.eup %3256  ;;  %v729_v58 = vmul.f32 %v3255_v54, %v3241_v17 }
 0x4a4   :  { %v727_v59 = vmul.f32 %v3257_v55, %v3239_v15  ;;  %v3230_v55 = vld [vmem:[%s4074_s6 + $0x8] sm:$0xff]  }
 0x4a5   :  { %v743_v60 = vpack.c.bf16 %v729_v58, %v729_v58 }
 0x4a6   :  { %v742_v61 = vpack.c.bf16 %v727_v59, %v727_v59 }
 0x4a7   :  { %2986 = vmatmul.mubr.msk.bf16.vlgmr.msra.gmra.mxu0 %vm254_vm4, %v743_v60 }
 0x4a8   :  { %2980 = vmatmul.mubr.msk.bf16.vlgmr.msra.gmra.mxu1 %vm254_vm4, %v742_v61  ;;  %2996 = vmatpush3.bf16.msra.mxu0 %v901_v62  ;;  %v3231_v61 = vld [vmem:[%s4074_s6] sm:$0xff]  }
 0x4a9   :  { %2990 = vmatpush3.bf16.msra.mxu1 %v853_v63  ;;  %2991 = vmatprep.mubr.msk.bf16.mxu1 %vm3355_vm2, %v3353_v7 }
 0x4aa   :  { %2997 = vmatprep.mubr.msk.bf16.mxu0 %vm3355_vm2, %v3353_v7  ;;  %3001 = vmatprep.subr.bf16.mxu1 %v3353_v7 }
 0x4ab   :  { %3007 = vmatprep.subr.bf16.mxu0 %v3353_v7 }
 0x4b3   :  { %1087 = vrot.lane.b32.xlu0 %v3553_v57, %s3360_s25  ;;  %v949_v57 = vsel %vm755_vm5, %v944_v0, 0 }
 0x4ec   :  { %v713_v1 = vpop.xlane.xlu1 %712 }
 0x4ed   :  { %3258 = vrcp.f32 %v713_v1  ;;  %v710_v2 = vpop.xlane.xlu0 %709 }
 0x4ee   :  { %3260 = vrcp.f32 %v710_v2 }
 0x4f1   :  { %v992_v8 = vpop.permute.xlu0 %991 }
 0x4f2   :  { %v997_v12 = vsel %vm755_vm5, %v992_v8, 0 }
 0x4f4   :  { %v719_v3 = vpop.xlane.xlu1 %718 }
 0x4f5   :  { %3262 = vrcp.f32 %v719_v3 }
 0x4fa   :  { %v3259_v4 = vpop.eup %3258 }
 0x4fb   :  { %v3261_v5 = vpop.eup %3260  ;;  %v733_v6 = vmul.f32 %v3259_v4, %v3243_v28 }
 0x4fc   :  { %v731_v9 = vmul.f32 %v3261_v5, %v3654_v33  ;;  %v725_v18 = vpop.xlane.xlu1 %724 }
 0x4fd   :  { %v745_v10 = vpack.c.bf16 %v733_v6, %v733_v6  ;;  %3264 = vrcp.f32 %v725_v18 }
 0x4fe   :  { %v744_v11 = vpack.c.bf16 %v731_v9, %v731_v9 }
 0x4ff   :  { %2998 = vmatmul.mubr.msk.bf16.vlgmr.msra.gmra.mxu0 %vm254_vm4, %v745_v10  ;;  %v1237_v10 = vsel %vm178_vm3, %v3522_v32, 0.0 }
 0x500   :  { %2992 = vmatmul.mubr.msk.bf16.vlgmr.msra.gmra.mxu1 %vm254_vm4, %v744_v11  ;;  %3008 = vmatpush3.bf16.msra.mxu0 %v997_v12  ;;  %v1040_v25 = vpop.permute.xlu1 %1039  ;;  %v1246_v11 = vmul.f32 %v3522_v32, %v3522_v32 }
 0x501   :  { %3002 = vmatpush3.bf16.msra.mxu1 %v949_v57  ;;  %3009 = vmatprep.mubr.msk.bf16.mxu0 %vm3355_vm2, %v3353_v7  ;;  %v1045_v28 = vsel %vm755_vm5, %v1040_v25, 0  ;;  %v1247_v57 = vmul.f32 %v3520_v31, %v3520_v31 }
 0x502   :  { %v3263_v13 = vpop.eup %3262  ;;  %3019 = vmatprep.subr.bf16.mxu0 %v3353_v7  ;;  %3003 = vmatprep.mubr.msk.bf16.mxu1 %vm3355_vm2, %v3353_v7  ;;  %v1248_v12 = vsel %vm178_vm3, %v1246_v11, 0.0 }
 0x503   :  { %v737_v15 = vmul.f32 %v3263_v13, %v3659_v30  ;;  %3013 = vmatprep.subr.bf16.mxu1 %v3353_v7  ;;  %v1251_v13 = vsel %vm178_vm3, %v1247_v57, 0.0 }
 0x505   :  { %v747_v17 = vpack.c.bf16 %v737_v15, %v737_v15  ;;  %v1240_v15 = vsel %vm178_vm3, %v3520_v31, 0.0 }
 0x507   :  { %3010 = vmatmul.mubr.msk.bf16.vlgmr.msra.gmra.mxu0 %vm254_vm4, %v747_v17 }
 0x508   :  { %3021 = vmatprep.mubr.msk.bf16.mxu0 %vm3355_vm2, %v3353_v7 }
 0x50a   :  { %v3265_v44 = vpop.eup %3264 }
 0x50b   :  { %v741_v22 = vmul.f32 %v3265_v44, %v3663_v36 }
 0x50d   :  { %v749_v24 = vpack.c.bf16 %v741_v22, %v741_v22 }
 0x522   :  { %v716_v19 = vpop.xlane.xlu0 %715 }
 0x523   :  { %3266 = vrcp.f32 %v716_v19 }
 0x526   :  { %v722_v45 = vpop.xlane.xlu0 %721 }
 0x527   :  { %3268 = vrcp.f32 %v722_v45 }
 0x52a   :  { %v1088_v16 = vpop.permute.xlu0 %1087 }
 0x52b   :  { %v1093_v23 = vsel %vm755_vm5, %v1088_v16, 0 }
 0x52c   :  { %3020 = vmatpush3.bf16.msra.mxu0 %v1093_v23 }
 0x52d   :  { %3033 = vmatprep.subr.bf16.mxu0 %v3353_v7 }
 0x52f   :  { %3022 = vmatmul.mubr.msk.bf16.vlgmr.msra.gmra.mxu0 %vm254_vm4, %v749_v24 }
 0x530   :  { %v3267_v20 = vpop.eup %3266  ;;  %3037 = vmatprep.mubr.msk.bf16.mxu0 %vm3355_vm2, %v3353_v7 }
 0x531   :  { %v735_v21 = vmul.f32 %v3267_v20, %v3673_v51 }
 0x533   :  { %v746_v26 = vpack.c.bf16 %v735_v21, %v735_v21 }
 0x534   :  { %v3269_v27 = vpop.eup %3268 }
 0x535   :  { %3004 = vmatmul.mubr.msk.bf16.vlgmr.msra.gmra.mxu1 %vm254_vm4, %v746_v26  ;;  %v739_v33 = vmul.f32 %v3269_v27, %v3677_v43 }
 0x536   :  { %3014 = vmatpush3.bf16.msra.mxu1 %v1045_v28  ;;  %3015 = vmatprep.mubr.msk.bf16.mxu1 %vm3355_vm2, %v3353_v7 }
 0x537   :  { %3025 = vmatprep.subr.bf16.mxu1 %v3353_v7  ;;  %v748_v34 = vpack.c.bf16 %v739_v33, %v739_v33 }
 0x53d   :  { %3016 = vmatmul.mubr.msk.bf16.vlgmr.msra.gmra.mxu1 %vm254_vm4, %v748_v34 }
 0x53e   :  { %3029 = vmatprep.mubr.msk.bf16.mxu1 %vm3355_vm2, %v3353_v7  ;;  %3026 = vmatpush3.bf16.msra.mxu1 %v3230_v55  ;;  %v2735_v55 = vld [vmem:[%s4075_s7] ss:$0 sm:$0xff] }
 0x53f   :  { %3027 = vmatprep.subr.bf16.mxu1 %v3353_v7 }
 0x542   :  { %3028 = vmatpush3.bf16.msra.mxu1 %v3231_v61 }
 0x543   :  { %3041 = vmatprep.subr.bf16.mxu1 %v3353_v7 }
 0x567   :  { %v3724_v52 = vpop.f32.mrf.mxu0 }
 0x568   :  { %v3726_v29 = vpop.f32.mrf.mxu1 }
 0x569   :  { %v2987_v30 = vpop.f32.mrf.mxu0 }
 0x56a   :  { %v2981_v35 = vpop.f32.mrf.mxu1 }
 0x56b   :  { %v844_v36 = vpop.f32.mrf.mxu0 }
 0x56c   :  { %v796_v37 = vpop.f32.mrf.mxu1 }
 0x56d   :  { %v2988_v38 = vpop.f32.mrf.mxu0 }
 0x56e   :  { %v2982_v39 = vpop.f32.mrf.mxu1 }
 0x5bf   :  { %v937_v40 = vpop.f32.mrf.mxu0 }
 0x5c0   :  { %v889_v41 = vpop.f32.mrf.mxu1 }
 0x5c1   :  { %v3183_v42 = vpack.i.bf16 %v937_v40, %v889_v41  ;;  %v2999_v46 = vpop.f32.mrf.mxu0 }
 0x5c2   :  { %v2993_v47 = vpop.f32.mrf.mxu1 }
 0x5c3   :  { %3184 = vrot.lane.b32.xlu1 %v3183_v42, %s3361_s26  ;;  %v940_v48 = vpop.f32.mrf.mxu0 }
 0x5c4   :  { %v892_v49 = vpop.f32.mrf.mxu1 }
 0x5c5   :  { %v3000_v50 = vpop.f32.mrf.mxu0 }
 0x5c6   :  { %v2994_v51 = vpop.f32.mrf.mxu1 }
 0x5c7   :  { %v1033_v53 = vpop.f32.mrf.mxu0 }
 0x5c9   :  { %v3011_v43 = vpop.f32.mrf.mxu0 }
 0x5cb   :  { %v1036_v56 = vpop.f32.mrf.mxu0 }
 0x5cd   :  { %v3012_v54 = vpop.f32.mrf.mxu0 }
 0x5ef   :  { %v1129_v58 = vpop.f32.mrf.mxu0 }
 0x5f1   :  { %v3023_v59 = vpop.f32.mrf.mxu0 }
 0x5f3   :  { %v1132_v60 = vpop.f32.mrf.mxu0 }
 0x5f5   :  { %v985_v62 = vpop.f32.mrf.mxu1  ;;  %v3024_v63 = vpop.f32.mrf.mxu0 }
 0x5f6   :  { %v3188_v0 = vpack.i.bf16 %v1033_v53, %v985_v62  ;;  %v2739_v53 = vld [vmem:[%s4071_s3] ss:$0 sm:$0xff] }
 0x5f7   :  { %v3005_v1 = vpop.f32.mrf.mxu1 }
 0x5f8   :  { %3189 = vrot.lane.b32.xlu0 %v3188_v0, %s3362_s30 }
 0x5f9   :  { %v988_v2 = vpop.f32.mrf.mxu1 }
 0x5fb   :  { %v3006_v3 = vpop.f32.mrf.mxu1 }
 0x5fd   :  { %v1081_v4 = vpop.f32.mrf.mxu1 }
 0x5fe   :  { %v3193_v5 = vpack.i.bf16 %v1129_v58, %v1081_v4  ;;  %v2740_v58 = vld [vmem:[%s4072_s4] ss:$0 sm:$0xff] }
 0x5ff   :  { %v3017_v6 = vpop.f32.mrf.mxu1 }
 0x600   :  { %3194 = vrot.lane.b32.xlu1 %v3193_v5, %s3363_s1 }
 0x601   :  { %v1084_v8 = vpop.f32.mrf.mxu1 }
 0x603   :  { %v3018_v9 = vpop.f32.mrf.mxu1 }
 0x617   :  { %1238 = vadd.xlane.f32.xlu0 %v1237_v10 }
 0x61b   :  { %1249 = vadd.xlane.f32.xlu0 %v1248_v12 }
 0x61f   :  { %1252 = vadd.xlane.f32.xlu0 %v1251_v13 }
 0x624   :  { %1241 = vadd.xlane.f32.xlu1 %v1240_v15 }
 0x635   :  { %v3185_v17 = vpop.permute.xlu1 %3184 }
 0x636   :  { %v3187_v19 = vunpack.i.h.bf16 %v3185_v17  ;;  %v3186_v44 = vunpack.i.l.bf16 %v3185_v17 }
 0x638   :  { %v1160_v23 = vsel %vm254_vm4, %v3724_v52, %v3187_v19  ;;  %v1159_v24 = vsel %vm254_vm4, %v3726_v29, %v3186_v44 }
 0x66a   :  { %v3190_v18 = vpop.permute.xlu0 %3189 }
 0x66b   :  { %v3192_v45 = vunpack.i.h.bf16 %v3190_v18  ;;  %v3191_v22 = vunpack.i.l.bf16 %v3190_v18 }
 0x66d   :  { %v1163_v25 = vsel %vm1161_vm7, %v1160_v23, %v3192_v45  ;;  %v1162_v26 = vsel %vm1161_vm7, %v1159_v24, %v3191_v22 }
 0x672   :  { %v3195_v16 = vpop.permute.xlu1 %3194 }
 0x673   :  { %v3197_v20 = vunpack.i.h.bf16 %v3195_v16  ;;  %v3196_v21 = vunpack.i.l.bf16 %v3195_v16 }
 0x675   :  { %v1166_v27 = vsel %vm1164_vm8, %v1163_v25, %v3197_v20  ;;  %v1165_v28 = vsel %vm1164_vm8, %v1162_v26, %v3196_v21  ;;  %v2741_v25 = vld [vmem:[%s4076_s8] ss:$0 sm:$0xff] }
 0x676   :  { %v1167_v33 = vpack.c.bf16 %v1166_v27, %v1165_v28  ;;  %v2742_v27 = vld [vmem:[%s4077_s9] ss:$0 sm:$0xff] }
 0x678   :  { %3030 = vmatmul.mubr.msk.bf16.vlgmr.msra.gmra.mxu1 %vm178_vm3, %v1167_v33 }
 0x679   :  { %3043 = vmatprep.mubr.msk.bf16.mxu1 %vm3355_vm2, %v3353_v7 }
 0x6a0   :  { %v1239_v34 = vpop.xlane.xlu0 %1238 }
 0x6a1   :  { %v1244_v29 = vmul.f32 0.03125, %v1239_v34 }
 0x6a3   :  { %v1256_v37 = vmul.f32 %v1244_v29, %v1244_v29  ;;  %v1264_v49 = vsub.f32 %v3522_v32, %v1244_v29 }
 0x6a4   :  { %v1250_v52 = vpop.xlane.xlu0 %1249 }
 0x6a5   :  { %v1254_v35 = vmul.f32 0.03125, %v1250_v52 }
 0x6a7   :  { %v1258_v39 = vsub.f32 %v1254_v35, %v1256_v37 }
 0x6a8   :  { %v1253_v38 = vpop.xlane.xlu0 %1252 }
 0x6a9   :  { %v1255_v41 = vmul.f32 0.03125, %v1253_v38  ;;  %v1260_v42 = vadd.f32 1e-05, %v1258_v39 }
 0x6ab   :  { %3270 = vrsqrt.f32 %v1260_v42  ;;  %v3232_v42 = vld [vmem:[%s4073_s5 + $0x18] sm:$0xff]  }
 0x6ac   :  { %3034 = vmatpush3.bf16.msra.mxu0 %v3232_v42 }
 0x6ad   :  { %v1242_v30 = vpop.xlane.xlu1 %1241  ;;  %3035 = vmatprep.subr.bf16.mxu0 %v3353_v7 }
 0x6ae   :  { %v1245_v36 = vmul.f32 0.03125, %v1242_v30 }
 0x6b0   :  { %v1257_v40 = vmul.f32 %v1245_v36, %v1245_v36  ;;  %v1265_v43 = vsub.f32 %v3520_v31, %v1245_v36 }
 0x6b2   :  { %v1259_v46 = vsub.f32 %v1255_v41, %v1257_v40 }
 0x6b4   :  { %v1261_v47 = vadd.f32 1e-05, %v1259_v46  ;;  %v3233_v46 = vld [vmem:[%s4073_s5 + $0x10] sm:$0xff]  }
 0x6b5   :  { %3036 = vmatpush3.bf16.msra.mxu0 %v3233_v46 }
 0x6b6   :  { %3272 = vrsqrt.f32 %v1261_v47  ;;  %3047 = vmatprep.subr.bf16.mxu0 %v3353_v7 }
 0x6b8   :  { %v3271_v48 = vpop.eup %3270 }
 0x6b9   :  { %v1266_v50 = vmul.f32 %v3271_v48, %v1264_v49 }
 0x6bb   :  { %v1274_v54 = vmul.f32 %v2739_v53, %v1266_v50 }
 0x6bd   :  { %v1282_v60 = vadd.f32 %v2740_v58, %v1274_v54 }
 0x6c3   :  { %v3273_v51 = vpop.eup %3272 }
 0x6c4   :  { %v1267_v56 = vmul.f32 %v3273_v51, %v1265_v43 }
 0x6c6   :  { %v1275_v61 = vmul.f32 %v2739_v53, %v1267_v56 }
 0x6c8   :  { %v1283_v2 = vadd.f32 %v2740_v58, %v1275_v61 }
 0x738   :  { %v1228_v59 = vpop.f32.mrf.mxu1 }
 0x739   :  { %v1229_v32 = vadd.f32 %v2735_v55, %v1228_v59 }
 0x73a   :  { %v3031_v62 = vpop.f32.mrf.mxu1 }
 0x73b   :  { %v1284_v63 = vadd.f32 %v1282_v60, %v1229_v32 }
 0x73c   :  { %v1231_v0 = vpop.f32.mrf.mxu1 }
 0x73d   :  { %v1232_v1 = vadd.f32 %v2735_v55, %v1231_v0  ;;  %v1288_v31 = vsel %vm178_vm3, %v1284_v63, 0.0  ;;  %v1296_v3 = vmul.f32 %v1284_v63, %v1284_v63 }
 0x73e   :  { %1289 = vadd.xlane.f32.xlu1 %v1288_v31  ;;  %v3032_v4 = vpop.f32.mrf.mxu1 }
 0x73f   :  { %v1285_v5 = vadd.f32 %v1283_v2, %v1232_v1  ;;  %v1298_v6 = vsel %vm178_vm3, %v1296_v3, 0.0 }
 0x741   :  { %v1291_v8 = vsel %vm178_vm3, %v1285_v5, 0.0  ;;  %v1297_v9 = vmul.f32 %v1285_v5, %v1285_v5 }
 0x742   :  { %1299 = vadd.xlane.f32.xlu1 %v1298_v6  ;;  %1292 = vadd.xlane.f32.xlu0 %v1291_v8 }
 0x743   :  { %v1301_v10 = vsel %vm178_vm3, %v1297_v9, 0.0 }
 0x746   :  { %1302 = vadd.xlane.f32.xlu0 %v1301_v10 }
 0x7c7   :  { %v1290_v11 = vpop.xlane.xlu1 %1289 }
 0x7c8   :  { %v1294_v12 = vmul.f32 0.03125, %v1290_v11 }
 0x7ca   :  { %v1306_v15 = vmul.f32 %v1294_v12, %v1294_v12  ;;  %v1314_v20 = vsub.f32 %v1284_v63, %v1294_v12 }
 0x7cb   :  { %v1300_v57 = vpop.xlane.xlu1 %1299  ;;  %v1293_v13 = vpop.xlane.xlu0 %1292 }
 0x7cc   :  { %v1304_v17 = vmul.f32 0.03125, %v1300_v57  ;;  %v1295_v18 = vmul.f32 0.03125, %v1293_v13 }
 0x7ce   :  { %v1308_v19 = vsub.f32 %v1304_v17, %v1306_v15  ;;  %v1307_v22 = vmul.f32 %v1295_v18, %v1295_v18  ;;  %v1315_v28 = vsub.f32 %v1285_v5, %v1295_v18 }
 0x7cf   :  { %v1303_v44 = vpop.xlane.xlu0 %1302 }
 0x7d0   :  { %v1310_v45 = vadd.f32 1e-05, %v1308_v19  ;;  %v1305_v16 = vmul.f32 0.03125, %v1303_v44 }
 0x7d2   :  { %3274 = vrsqrt.f32 %v1310_v45  ;;  %v1309_v23 = vsub.f32 %v1305_v16, %v1307_v22 }
 0x7d4   :  { %v1311_v24 = vadd.f32 1e-05, %v1309_v23 }
 0x7d6   :  { %3276 = vrsqrt.f32 %v1311_v24 }
 0x7df   :  { %v3275_v21 = vpop.eup %3274 }
 0x7e0   :  { %v1316_v26 = vmul.f32 %v3275_v21, %v1314_v20 }
 0x7e2   :  { %v1324_v33 = vmul.f32 %v2741_v25, %v1316_v26 }
 0x7e3   :  { %v3277_v34 = vpop.eup %3276 }
 0x7e4   :  { %v1332_v52 = vadd.f32 %v2742_v27, %v1324_v33  ;;  %v1317_v30 = vmul.f32 %v3277_v34, %v1315_v28 }
 0x7e6   :  { %v1334_v29 = vsel %vm178_vm3, %v1332_v52, 0.0  ;;  %v1342_v35 = vmul.f32 %v1332_v52, %v1332_v52  ;;  %v1325_v36 = vmul.f32 %v2741_v25, %v1317_v30 }
 0x7e7   :  { %1335 = vadd.xlane.f32.xlu1 %v1334_v29 }
 0x7e8   :  { %v1333_v37 = vadd.f32 %v2742_v27, %v1325_v36  ;;  %v1344_v38 = vsel %vm178_vm3, %v1342_v35, 0.0 }
 0x7ea   :  { %v1337_v39 = vsel %vm178_vm3, %v1333_v37, 0.0  ;;  %v1343_v40 = vmul.f32 %v1333_v37, %v1333_v37 }
 0x7eb   :  { %1345 = vadd.xlane.f32.xlu1 %v1344_v38  ;;  %1338 = vadd.xlane.f32.xlu0 %v1337_v39 }
 0x7ec   :  { %v1347_v41 = vsel %vm178_vm3, %v1343_v40, 0.0 }
 0x7ef   :  { %1348 = vadd.xlane.f32.xlu0 %v1347_v41 }
 0x870   :  { %v1336_v47 = vpop.xlane.xlu1 %1335 }
 0x871   :  { %v1340_v48 = vmul.f32 0.03125, %v1336_v47 }
 0x873   :  { %v1352_v51 = vmul.f32 %v1340_v48, %v1340_v48  ;;  %v1360_v61 = vsub.f32 %v1332_v52, %v1340_v48 }
 0x874   :  { %v1346_v49 = vpop.xlane.xlu1 %1345  ;;  %v1339_v50 = vpop.xlane.xlu0 %1338 }
 0x875   :  { %v1350_v53 = vmul.f32 0.03125, %v1346_v49  ;;  %v1341_v43 = vmul.f32 0.03125, %v1339_v50 }
 0x877   :  { %v1354_v56 = vsub.f32 %v1350_v53, %v1352_v51  ;;  %v1353_v58 = vmul.f32 %v1341_v43, %v1341_v43  ;;  %v1361_v1 = vsub.f32 %v1333_v37, %v1341_v43 }
 0x878   :  { %v1349_v54 = vpop.xlane.xlu0 %1348 }
 0x879   :  { %v1356_v55 = vadd.f32 1e-05, %v1354_v56  ;;  %v1351_v59 = vmul.f32 0.03125, %v1349_v54 }
 0x87b   :  { %3278 = vrsqrt.f32 %v1356_v55  ;;  %v1355_v32 = vsub.f32 %v1351_v59, %v1353_v58 }
 0x87d   :  { %v1357_v60 = vadd.f32 1e-05, %v1355_v32 }
 0x87f   :  { %3280 = vrsqrt.f32 %v1357_v60 }
 0x888   :  { %v3279_v62 = vpop.eup %3278 }
 0x889   :  { %v1362_v63 = vmul.f32 %v3279_v62, %v1360_v61 }
 0x88b   :  { %v1364_v0 = vmul.f32 %v2741_v25, %v1362_v63 }
 0x88c   :  { %v3281_v2 = vpop.eup %3280 }
 0x88d   :  { %v1363_v31 = vmul.f32 %v3281_v2, %v1361_v1  ;;  %v1366_v3 = vadd.f32 %v2742_v27, %v1364_v0 }
 0x88f   :  { %v1365_v4 = vmul.f32 %v2741_v25, %v1363_v31  ;;  %v3793_v6 = vadd.f32 %v1366_v3, %v1332_v52 }
 0x891   :  { %v1367_v5 = vadd.f32 %v2742_v27, %v1365_v4 }
 0x893   :  { %v3795_v8 = vadd.f32 %v1367_v5, %v1333_v37 }
 0x895   :  { %v1370_v9 = vpack.c.bf16 %v3795_v8, %v3793_v6 }
 0x897   :  { %3038 = vmatmul.mubr.msk.bf16.vlgmr.msra.gmra.mxu0 %vm178_vm3, %v1370_v9 }
 0x898   :  { %3049 = vmatprep.mubr.msk.bf16.mxu0 %vm3355_vm2, %v3353_v7 }
 0x957   :  { %v1425_v10 = vpop.f32.mrf.mxu0 }
 0x958   :  { %v1452_v17 = vpack.c.bf16 %v1425_v10, %v1425_v10 }
 0x959   :  { %v3039_v11 = vpop.f32.mrf.mxu0 }
 0x95b   :  { %v1428_v12 = vpop.f32.mrf.mxu0 }
 0x95c   :  { %v3203_v57 = vpack.i.bf16 %v1428_v12, %v1425_v10  ;;  %v1453_v15 = vpack.c.bf16 %v1428_v12, %v1428_v12 }
 0x95d   :  { %v3040_v13 = vpop.f32.mrf.mxu0 }
 0x95e   :  { %3204 = vrot.lane.b32.xlu0 %v3203_v57, %s3358_s23  ;;  %3199 = vrot.lane.b32.xlu1 %v3203_v57, %s3357_s22 }
 0x962   :  { %3209 = vrot.lane.b32.xlu1 %v3203_v57, %s3356_s2  ;;  %1510 = vrot.lane.b32.xlu0 %v1453_v15, %s3359_s24 }
 0x966   :  { %1461 = vrot.lane.b32.xlu1 %v1452_v17, %s3359_s24 }
 0x9d0   :  { %v3205_v18 = vpop.permute.xlu0 %3204  ;;  %v3200_v19 = vpop.permute.xlu1 %3199 }
 0x9d1   :  { %v3202_v44 = vunpack.i.h.bf16 %v3200_v19  ;;  %v3201_v45 = vunpack.i.l.bf16 %v3200_v19  ;;  %v3207_v22 = vunpack.i.h.bf16 %v3205_v18  ;;  %v3206_v16 = vunpack.i.l.bf16 %v3205_v18 }
 0x9d3   :  { %v3807_v23 = vpack.c.bf16 %v3202_v44, %v3202_v44  ;;  %v3809_v24 = vpack.c.bf16 %v3201_v45, %v3201_v45  ;;  %v3816_v26 = vpack.c.bf16 %v3207_v22, %v3207_v22  ;;  %v3818_v27 = vpack.c.bf16 %v3206_v16, %v3206_v16 }
 0x9d4   :  { %v3210_v20 = vpop.permute.xlu1 %3209  ;;  %v1511_v21 = vpop.permute.xlu0 %1510 }
 0x9d5   :  { %v1516_v25 = vsel %vm254_vm4, %v1511_v21, 0  ;;  %1559 = vrot.lane.b32.xlu1 %v3809_v24, %s3359_s24  ;;  %1608 = vrot.lane.b32.xlu0 %v3807_v23, %s3359_s24  ;;  %v3212_v28 = vunpack.i.h.bf16 %v3210_v20  ;;  %v3211_v33 = vunpack.i.l.bf16 %v3210_v20 }
 0x9d6   :  { %3048 = vmatpush3.bf16.xpose.msra.mxu0 %v1516_v25 }
 0x9d7   :  { %3059 = vmatprep.subr.bf16.mxu0 %v3353_v7  ;;  %v3826_v30 = vpack.c.bf16 %v3212_v28, %v3212_v28  ;;  %v3828_v29 = vpack.c.bf16 %v3211_v33, %v3211_v33 }
 0x9d8   :  { %v1462_v34 = vpop.permute.xlu1 %1461 }
 0x9d9   :  { %v1467_v52 = vsel %vm254_vm4, %v1462_v34, 0  ;;  %1657 = vrot.lane.b32.xlu1 %v3818_v27, %s3359_s24  ;;  %1706 = vrot.lane.b32.xlu0 %v3816_v26, %s3359_s24 }
 0x9da   :  { %3042 = vmatpush3.bf16.xpose.msra.mxu1 %v1467_v52 }
 0x9db   :  { %3053 = vmatprep.subr.bf16.mxu1 %v3353_v7 }
 0x9dd   :  { %1755 = vrot.lane.b32.xlu1 %v3828_v29, %s3359_s24  ;;  %1804 = vrot.lane.b32.xlu0 %v3826_v30, %s3359_s24 }
 0x9de   :  { %3050 = vmatmul.mubr.msk.bf16.vlgmr.msra.gmra.mxu0 %vm254_vm4, %v1453_v15 }
 0x9df   :  { %3061 = vmatprep.mubr.msk.bf16.mxu0 %vm3355_vm2, %v3353_v7 }
 0x9e1   :  { %3044 = vmatmul.mubr.msk.bf16.vlgmr.msra.gmra.mxu1 %vm254_vm4, %v1452_v17  ;;  %2004 = vrot.lane.b32.xlu1 %v1453_v15, %s3360_s25 }
 0x9e2   :  { %1956 = vrot.lane.b32.xlu0 %v1452_v17, %s3360_s25  ;;  %3055 = vmatprep.mubr.msk.bf16.mxu1 %vm3355_vm2, %v3353_v7 }
 0xa47   :  { %v1560_v35 = vpop.permute.xlu1 %1559  ;;  %v1609_v36 = vpop.permute.xlu0 %1608 }
 0xa48   :  { %v1565_v37 = vsel %vm254_vm4, %v1560_v35, 0  ;;  %v1614_v38 = vsel %vm254_vm4, %v1609_v36, 0 }
 0xa49   :  { %3054 = vmatpush3.bf16.xpose.msra.mxu1 %v1565_v37  ;;  %3060 = vmatpush3.bf16.xpose.msra.mxu0 %v1614_v38 }
 0xa4a   :  { %3065 = vmatprep.subr.bf16.mxu1 %v3353_v7  ;;  %3071 = vmatprep.subr.bf16.mxu0 %v3353_v7 }
 0xa4b   :  { %v1658_v39 = vpop.permute.xlu1 %1657  ;;  %v1707_v40 = vpop.permute.xlu0 %1706 }
 0xa4c   :  { %v1663_v41 = vsel %vm254_vm4, %v1658_v39, 0  ;;  %v1712_v42 = vsel %vm254_vm4, %v1707_v40, 0 }
 0xa4f   :  { %v1756_v46 = vpop.permute.xlu1 %1755  ;;  %v1805_v47 = vpop.permute.xlu0 %1804 }
 0xa50   :  { %3056 = vmatmul.mubr.msk.bf16.vlgmr.msra.gmra.mxu1 %vm254_vm4, %v3809_v24  ;;  %3062 = vmatmul.mubr.msk.bf16.vlgmr.msra.gmra.mxu0 %vm254_vm4, %v3807_v23  ;;  %v1761_v48 = vsel %vm254_vm4, %v1756_v46, 0  ;;  %v1810_v49 = vsel %vm254_vm4, %v1805_v47, 0 }
 0xa51   :  { %3066 = vmatpush3.bf16.xpose.msra.mxu1 %v1663_v41  ;;  %3072 = vmatpush3.bf16.xpose.msra.mxu0 %v1712_v42 }
 0xa52   :  { %3067 = vmatprep.mubr.msk.bf16.mxu1 %vm3355_vm2, %v3353_v7  ;;  %3073 = vmatprep.mubr.msk.bf16.mxu0 %vm3355_vm2, %v3353_v7 }
 0xa53   :  { %3077 = vmatprep.subr.bf16.mxu1 %v3353_v7  ;;  %3083 = vmatprep.subr.bf16.mxu0 %v3353_v7  ;;  %v2005_v50 = vpop.permute.xlu1 %2004 }
 0xa54   :  { %v1957_v51 = vpop.permute.xlu0 %1956  ;;  %v2010_v53 = vsel %vm755_vm5, %v2005_v50, 0 }
 0xa55   :  { %v1962_v43 = vsel %vm755_vm5, %v1957_v51, 0 }
 0xa58   :  { %3068 = vmatmul.mubr.msk.bf16.vlgmr.msra.gmra.mxu1 %vm254_vm4, %v3818_v27  ;;  %3074 = vmatmul.mubr.msk.bf16.vlgmr.msra.gmra.mxu0 %vm254_vm4, %v3816_v26 }
 0xa59   :  { %3078 = vmatpush3.bf16.xpose.msra.mxu1 %v1761_v48  ;;  %3084 = vmatpush3.bf16.xpose.msra.mxu0 %v1810_v49 }
 0xa5a   :  { %3079 = vmatprep.mubr.msk.bf16.mxu1 %vm3355_vm2, %v3353_v7  ;;  %3085 = vmatprep.mubr.msk.bf16.mxu0 %vm3355_vm2, %v3353_v7 }
 0xa5b   :  { %3089 = vmatprep.subr.bf16.mxu1 %v3353_v7  ;;  %3095 = vmatprep.subr.bf16.mxu0 %v3353_v7 }
 0xa60   :  { %3080 = vmatmul.mubr.msk.bf16.vlgmr.msra.gmra.mxu1 %vm254_vm4, %v3828_v29  ;;  %3086 = vmatmul.mubr.msk.bf16.vlgmr.msra.gmra.mxu0 %vm254_vm4, %v3826_v30 }
 0xa61   :  { %3090 = vmatpush3.bf16.msra.mxu1 %v1962_v43  ;;  %3096 = vmatpush3.bf16.msra.mxu0 %v2010_v53 }
 0xa62   :  { %3091 = vmatprep.mubr.msk.bf16.mxu1 %vm3355_vm2, %v3353_v7  ;;  %3097 = vmatprep.mubr.msk.bf16.mxu0 %vm3355_vm2, %v3353_v7 }
 0xa63   :  { %3101 = vmatprep.subr.bf16.mxu1 %v3353_v7  ;;  %3107 = vmatprep.subr.bf16.mxu0 %v3353_v7 }
 0xa9e   :  { %v1552_v56 = vpop.f32.mrf.mxu0 }
 0xa9f   :  { %v1853_v54 = vsel %vm3612_vm6, %v1552_v56, -1e+30 }
 0xaa0   :  { %v3051_v55 = vpop.f32.mrf.mxu0  ;;  %v1863_v58 = vsel %vm254_vm4, %v1853_v54, -inf }
 0xaa1   :  { %1864 = vmax.xlane.f32.xlu0 %v1863_v58  ;;  %v1503_v59 = vpop.f32.mrf.mxu1 }
 0xaa2   :  { %v1852_v32 = vsel %vm3612_vm6, %v1503_v59, -1e+30  ;;  %v1555_v60 = vpop.f32.mrf.mxu0 }
 0xaa3   :  { %v3045_v61 = vpop.f32.mrf.mxu1  ;;  %v1860_v62 = vsel %vm254_vm4, %v1852_v32, -inf }
 0xaa4   :  { %v3052_v63 = vpop.f32.mrf.mxu0  ;;  %1861 = vmax.xlane.f32.xlu1 %v1860_v62 }
 0xaa5   :  { %v1506_v0 = vpop.f32.mrf.mxu1 }
 0xaa7   :  { %v3046_v1 = vpop.f32.mrf.mxu1 }
 0xb10   :  { %v1601_v2 = vpop.f32.mrf.mxu1  ;;  %v1650_v31 = vpop.f32.mrf.mxu0 }
 0xb11   :  { %v1854_v3 = vsel %vm3612_vm6, %v1601_v2, -1e+30  ;;  %v1855_v4 = vsel %vm3612_vm6, %v1650_v31, -1e+30 }
 0xb12   :  { %v3057_v5 = vpop.f32.mrf.mxu1  ;;  %v3063_v9 = vpop.f32.mrf.mxu0  ;;  %v1869_v10 = vsel %vm254_vm4, %v1855_v4, -inf  ;;  %v1866_v11 = vsel %vm254_vm4, %v1854_v3, -inf }
 0xb13   :  { %1870 = vmax.xlane.f32.xlu1 %v1869_v10  ;;  %1867 = vmax.xlane.f32.xlu0 %v1866_v11 }
 0xb14   :  { %v1604_v12 = vpop.f32.mrf.mxu1  ;;  %v1653_v57 = vpop.f32.mrf.mxu0 }
 0xb16   :  { %v3058_v13 = vpop.f32.mrf.mxu1  ;;  %v3064_v15 = vpop.f32.mrf.mxu0 }
 0xb18   :  { %v1699_v17 = vpop.f32.mrf.mxu1  ;;  %v1748_v18 = vpop.f32.mrf.mxu0 }
 0xb19   :  { %v3897_v19 = vsel %vm3612_vm6, %v1699_v17, -1e+30  ;;  %v1857_v44 = vsel %vm3612_vm6, %v1748_v18, -1e+30 }
 0xb1a   :  { %v3069_v45 = vpop.f32.mrf.mxu1  ;;  %v3075_v22 = vpop.f32.mrf.mxu0  ;;  %v1875_v16 = vsel %vm254_vm4, %v1857_v44, -inf  ;;  %v1872_v20 = vsel %vm254_vm4, %v3897_v19, -inf }
 0xb1b   :  { %1876 = vmax.xlane.f32.xlu1 %v1875_v16  ;;  %1873 = vmax.xlane.f32.xlu0 %v1872_v20 }
 0xb1c   :  { %v1702_v21 = vpop.f32.mrf.mxu1  ;;  %v1751_v25 = vpop.f32.mrf.mxu0 }
 0xb1e   :  { %v3070_v28 = vpop.f32.mrf.mxu1  ;;  %v3076_v33 = vpop.f32.mrf.mxu0 }
 0xb20   :  { %v1797_v34 = vpop.f32.mrf.mxu1  ;;  %v1846_v52 = vpop.f32.mrf.mxu0 }
 0xb21   :  { %v3906_v35 = vsel %vm3612_vm6, %v1797_v34, -1e+30  ;;  %v1859_v36 = vsel %vm3612_vm6, %v1846_v52, -1e+30 }
 0xb22   :  { %v3081_v37 = vpop.f32.mrf.mxu1  ;;  %v3087_v38 = vpop.f32.mrf.mxu0  ;;  %v1881_v39 = vsel %vm254_vm4, %v1859_v36, -inf  ;;  %v1878_v40 = vsel %vm254_vm4, %v3906_v35, -inf }
 0xb23   :  { %1882 = vmax.xlane.f32.xlu1 %v1881_v39  ;;  %1879 = vmax.xlane.f32.xlu0 %v1878_v40 }
 0xb24   :  { %v1800_v41 = vpop.f32.mrf.mxu1  ;;  %v1849_v42 = vpop.f32.mrf.mxu0 }
 0xb26   :  { %v3082_v46 = vpop.f32.mrf.mxu1  ;;  %v3088_v47 = vpop.f32.mrf.mxu0 }
 0xb2a   :  { %v1865_v14 = vpop.xlane.xlu0 %1864 }
 0xb2b   :  { %v1885_v49 = vsub.f32 %v1853_v54, %v1865_v14 }
 0xb2d   :  { %v1862_v48 = vpop.xlane.xlu1 %1861  ;;  %v1894_v51 = vmul.f32 1.442695, %v1885_v49 }
 0xb2e   :  { %v1884_v50 = vsub.f32 %v1852_v32, %v1862_v48 }
 0xb2f   :  { %3282 = vpow2.f32 %v1894_v51 }
 0xb30   :  { %v1892_v53 = vmul.f32 1.442695, %v1884_v50 }
 0xb32   :  { %3284 = vpow2.f32 %v1892_v53 }
 0xb34   :  { %2052 = vrot.lane.b32.xlu1 %v3809_v24, %s3360_s25 }
 0xb39   :  { %2100 = vrot.lane.b32.xlu0 %v3807_v23, %s3360_s25 }
 0xb3c   :  { %v3283_v43 = vpop.eup %3282 }
 0xb3d   :  { %v1911_v55 = vsel %vm254_vm4, %v3283_v43, 0.0 }
 0xb3f   :  { %v3285_v56 = vpop.eup %3284 }
 0xb40   :  { %v1908_v58 = vsel %vm254_vm4, %v3285_v56, 0.0 }
 0xb58   :  { %1912 = vadd.xlane.f32.xlu1 %v1911_v55  ;;  %1909 = vadd.xlane.f32.xlu0 %v1908_v58 }
 0xb69   :  { %2148 = vrot.lane.b32.xlu1 %v3818_v27, %s3360_s25 }
 0xb9c   :  { %v1871_v23 = vpop.xlane.xlu1 %1870  ;;  %v1868_v24 = vpop.xlane.xlu0 %1867 }
 0xb9d   :  { %v1887_v59 = vsub.f32 %v1855_v4, %v1871_v23  ;;  %v1886_v54 = vsub.f32 %v1854_v3, %v1868_v24 }
 0xb9f   :  { %v1898_v32 = vmul.f32 1.442695, %v1887_v59  ;;  %v1896_v60 = vmul.f32 1.442695, %v1886_v54 }
 0xba1   :  { %3286 = vpow2.f32 %v1898_v32 }
 0xba2   :  { %3288 = vpow2.f32 %v1896_v60 }
 0xba4   :  { %v1877_v61 = vpop.xlane.xlu1 %1876  ;;  %v1874_v12 = vpop.xlane.xlu0 %1873 }
 0xba5   :  { %v1889_v62 = vsub.f32 %v1857_v44, %v1877_v61  ;;  %v1888_v57 = vsub.f32 %v3897_v19, %v1874_v12 }
 0xba7   :  { %v1902_v63 = vmul.f32 1.442695, %v1889_v62  ;;  %v1900_v15 = vmul.f32 1.442695, %v1888_v57 }
 0xba9   :  { %3290 = vpow2.f32 %v1902_v63 }
 0xbac   :  { %v1883_v0 = vpop.xlane.xlu1 %1882  ;;  %v1880_v13 = vpop.xlane.xlu0 %1879 }
 0xbad   :  { %v1891_v1 = vsub.f32 %v1859_v36, %v1883_v0  ;;  %v1890_v17 = vsub.f32 %v3906_v35, %v1880_v13 }
 0xbae   :  { %v3287_v2 = vpop.eup %3286 }
 0xbaf   :  { %v3921_v31 = vpop.eup %3288  ;;  %v1906_v5 = vmul.f32 1.442695, %v1891_v1  ;;  %v1917_v27 = vsel %vm254_vm4, %v3287_v2, 0.0  ;;  %v1904_v18 = vmul.f32 1.442695, %v1890_v17 }
 0xbb0   :  { %1918 = vadd.xlane.f32.xlu1 %v1917_v27  ;;  %v1914_v3 = vsel %vm254_vm4, %v3921_v31, 0.0  ;;  %v2053_v44 = vpop.permute.xlu1 %2052  ;;  %v2101_v45 = vpop.permute.xlu0 %2100 }
 0xbb1   :  { %3292 = vpow2.f32 %v1906_v5  ;;  %1915 = vadd.xlane.f32.xlu0 %v1914_v3  ;;  %v2106_v35 = vsel %vm755_vm5, %v2101_v45, 0  ;;  %v2058_v36 = vsel %vm755_vm5, %v2053_v44, 0 }
 0xbb2   :  { %3294 = vpow2.f32 %v1900_v15 }
 0xbb3   :  { %3296 = vpow2.f32 %v1904_v18 }
 0xbb6   :  { %v3926_v4 = vpop.eup %3290 }
 0xbb7   :  { %v1923_v9 = vsel %vm254_vm4, %v3926_v4, 0.0 }
 0xbb8   :  { %1924 = vadd.xlane.f32.xlu1 %v1923_v9 }
 0xbbe   :  { %v3930_v10 = vpop.eup %3292 }
 0xbbf   :  { %v1929_v11 = vsel %vm254_vm4, %v3930_v10, 0.0  ;;  %v3940_v20 = vpop.eup %3294 }
 0xbc0   :  { %1930 = vadd.xlane.f32.xlu1 %v1929_v11  ;;  %v3944_v19 = vpop.eup %3296 }
 0xbc7   :  { %2196 = vrot.lane.b32.xlu0 %v3816_v26, %s3360_s25  ;;  %v1920_v26 = vsel %vm254_vm4, %v3940_v20, 0.0 }
 0xbd1   :  { %2244 = vrot.lane.b32.xlu1 %v3828_v29, %s3360_s25  ;;  %v1926_v29 = vsel %vm254_vm4, %v3944_v19, 0.0 }
 0xbe1   :  { %v1913_v22 = vpop.xlane.xlu1 %1912  ;;  %v1910_v16 = vpop.xlane.xlu0 %1909 }
 0xbe2   :  { %3298 = vrcp.f32 %v1913_v22 }
 0xbe3   :  { %3300 = vrcp.f32 %v1910_v16 }
 0xbe5   :  { %v2149_v37 = vpop.permute.xlu1 %2148 }
 0xbe6   :  { %1921 = vadd.xlane.f32.xlu0 %v1920_v26 }
 0xbea   :  { %1927 = vadd.xlane.f32.xlu0 %v1926_v29 }
 0xbef   :  { %v3299_v21 = vpop.eup %3298 }
 0xbf0   :  { %v3301_v25 = vpop.eup %3300  ;;  %v1935_v28 = vmul.f32 %v3299_v21, %v3283_v43  ;;  %v3234_v21 = vld [vmem:[%s4074_s6 + $0x18] sm:$0xff]  }
 0xbf1   :  { %v1933_v33 = vmul.f32 %v3301_v25, %v3285_v56 }
 0xbf2   :  { %v1949_v34 = vpack.c.bf16 %v1935_v28, %v1935_v28 }
 0xbf3   :  { %v1948_v52 = vpack.c.bf16 %v1933_v33, %v1933_v33 }
 0xbf4   :  { %3098 = vmatmul.mubr.msk.bf16.vlgmr.msra.gmra.mxu0 %vm254_vm4, %v1949_v34  ;;  %v3235_v34 = vld [vmem:[%s4074_s6 + $0x10] sm:$0xff]  }
 0xbf5   :  { %3092 = vmatmul.mubr.msk.bf16.vlgmr.msra.gmra.mxu1 %vm254_vm4, %v1948_v52  ;;  %3108 = vmatpush3.bf16.msra.mxu0 %v2106_v35 }
 0xbf6   :  { %3102 = vmatpush3.bf16.msra.mxu1 %v2058_v36  ;;  %3103 = vmatprep.mubr.msk.bf16.mxu1 %vm3355_vm2, %v3353_v7 }
 0xbf7   :  { %3109 = vmatprep.mubr.msk.bf16.mxu0 %vm3355_vm2, %v3353_v7  ;;  %3113 = vmatprep.subr.bf16.mxu1 %v3353_v7 }
 0xbf8   :  { %3119 = vmatprep.subr.bf16.mxu0 %v3353_v7 }
 0xc00   :  { %2292 = vrot.lane.b32.xlu0 %v3826_v30, %s3360_s25  ;;  %v2154_v30 = vsel %vm755_vm5, %v2149_v37, 0 }
 0xc39   :  { %v1919_v38 = vpop.xlane.xlu1 %1918 }
 0xc3a   :  { %3302 = vrcp.f32 %v1919_v38  ;;  %v1916_v39 = vpop.xlane.xlu0 %1915 }
 0xc3b   :  { %3304 = vrcp.f32 %v1916_v39 }
 0xc3e   :  { %v2197_v47 = vpop.permute.xlu0 %2196 }
 0xc3f   :  { %v2202_v50 = vsel %vm755_vm5, %v2197_v47, 0 }
 0xc41   :  { %v1925_v40 = vpop.xlane.xlu1 %1924 }
 0xc42   :  { %3306 = vrcp.f32 %v1925_v40 }
 0xc47   :  { %v3303_v41 = vpop.eup %3302 }
 0xc48   :  { %v3305_v42 = vpop.eup %3304  ;;  %v1939_v46 = vmul.f32 %v3303_v41, %v3287_v2 }
 0xc49   :  { %v1937_v14 = vmul.f32 %v3305_v42, %v3921_v31  ;;  %v1931_v56 = vpop.xlane.xlu1 %1930 }
 0xc4a   :  { %v1951_v48 = vpack.c.bf16 %v1939_v46, %v1939_v46  ;;  %3308 = vrcp.f32 %v1931_v56 }
 0xc4b   :  { %v1950_v49 = vpack.c.bf16 %v1937_v14, %v1937_v14  ;;  %v2444_v14 = vsel %vm178_vm3, %v3793_v6, 0.0 }
 0xc4c   :  { %3110 = vmatmul.mubr.msk.bf16.vlgmr.msra.gmra.mxu0 %vm254_vm4, %v1951_v48  ;;  %v2452_v48 = vmul.f32 %v3793_v6, %v3793_v6 }
 0xc4d   :  { %3104 = vmatmul.mubr.msk.bf16.vlgmr.msra.gmra.mxu1 %vm254_vm4, %v1950_v49  ;;  %3120 = vmatpush3.bf16.msra.mxu0 %v2202_v50  ;;  %v2245_v62 = vpop.permute.xlu1 %2244  ;;  %v2453_v50 = vmul.f32 %v3795_v8, %v3795_v8 }
 0xc4e   :  { %3114 = vmatpush3.bf16.msra.mxu1 %v2154_v30  ;;  %3121 = vmatprep.mubr.msk.bf16.mxu0 %vm3355_vm2, %v3353_v7  ;;  %v2250_v1 = vsel %vm755_vm5, %v2245_v62, 0  ;;  %v2454_v49 = vsel %vm178_vm3, %v2452_v48, 0.0 }
 0xc4f   :  { %v3307_v51 = vpop.eup %3306  ;;  %3131 = vmatprep.subr.bf16.mxu0 %v3353_v7  ;;  %3115 = vmatprep.mubr.msk.bf16.mxu1 %vm3355_vm2, %v3353_v7  ;;  %v2457_v30 = vsel %vm178_vm3, %v2453_v50, 0.0 }
 0xc50   :  { %v1943_v53 = vmul.f32 %v3307_v51, %v3926_v4  ;;  %3125 = vmatprep.subr.bf16.mxu1 %v3353_v7  ;;  %v2447_v51 = vsel %vm178_vm3, %v3795_v8, 0.0 }
 0xc52   :  { %v1953_v43 = vpack.c.bf16 %v1943_v53, %v1943_v53 }
 0xc54   :  { %3122 = vmatmul.mubr.msk.bf16.vlgmr.msra.gmra.mxu0 %vm254_vm4, %v1953_v43 }
 0xc55   :  { %3133 = vmatprep.mubr.msk.bf16.mxu0 %vm3355_vm2, %v3353_v7 }
 0xc57   :  { %v3309_v58 = vpop.eup %3308 }
 0xc58   :  { %v1947_v24 = vmul.f32 %v3309_v58, %v3930_v10 }
 0xc5a   :  { %v1955_v32 = vpack.c.bf16 %v1947_v24, %v1947_v24 }
 0xc6f   :  { %v1922_v55 = vpop.xlane.xlu0 %1921 }
 0xc70   :  { %3310 = vrcp.f32 %v1922_v55 }
 0xc73   :  { %v1928_v23 = vpop.xlane.xlu0 %1927 }
 0xc74   :  { %3312 = vrcp.f32 %v1928_v23 }
 0xc77   :  { %v2293_v59 = vpop.permute.xlu0 %2292 }
 0xc78   :  { %v2298_v54 = vsel %vm755_vm5, %v2293_v59, 0 }
 0xc79   :  { %3132 = vmatpush3.bf16.msra.mxu0 %v2298_v54 }
 0xc7a   :  { %3145 = vmatprep.subr.bf16.mxu0 %v3353_v7 }
 0xc7c   :  { %3134 = vmatmul.mubr.msk.bf16.vlgmr.msra.gmra.mxu0 %vm254_vm4, %v1955_v32 }
 0xc7d   :  { %v3311_v60 = vpop.eup %3310  ;;  %3149 = vmatprep.mubr.msk.bf16.mxu0 %vm3355_vm2, %v3353_v7 }
 0xc7e   :  { %v1941_v61 = vmul.f32 %v3311_v60, %v3940_v20 }
 0xc80   :  { %v1952_v63 = vpack.c.bf16 %v1941_v61, %v1941_v61 }
 0xc81   :  { %v3313_v0 = vpop.eup %3312 }
 0xc82   :  { %3116 = vmatmul.mubr.msk.bf16.vlgmr.msra.gmra.mxu1 %vm254_vm4, %v1952_v63  ;;  %v1945_v2 = vmul.f32 %v3313_v0, %v3944_v19 }
 0xc83   :  { %3126 = vmatpush3.bf16.msra.mxu1 %v2250_v1  ;;  %3127 = vmatprep.mubr.msk.bf16.mxu1 %vm3355_vm2, %v3353_v7 }
 0xc84   :  { %3137 = vmatprep.subr.bf16.mxu1 %v3353_v7  ;;  %v1954_v31 = vpack.c.bf16 %v1945_v2, %v1945_v2 }
 0xc8a   :  { %3128 = vmatmul.mubr.msk.bf16.vlgmr.msra.gmra.mxu1 %vm254_vm4, %v1954_v31 }
 0xc8b   :  { %3141 = vmatprep.mubr.msk.bf16.mxu1 %vm3355_vm2, %v3353_v7  ;;  %3138 = vmatpush3.bf16.msra.mxu1 %v3234_v21  ;;  %v2778_v21 = vld [vmem:[%s4072_s4 + $0x1] ss:$0 sm:$0xff] }
 0xc8c   :  { %3139 = vmatprep.subr.bf16.mxu1 %v3353_v7 }
 0xc8f   :  { %3140 = vmatpush3.bf16.msra.mxu1 %v3235_v34 }
 0xcb4   :  { %v2046_v5 = vpop.f32.mrf.mxu0 }
 0xcb5   :  { %v1998_v27 = vpop.f32.mrf.mxu1 }
 0xcb6   :  { %v3099_v3 = vpop.f32.mrf.mxu0 }
 0xcb7   :  { %v3093_v4 = vpop.f32.mrf.mxu1 }
 0xcb8   :  { %v2049_v9 = vpop.f32.mrf.mxu0 }
 0xcb9   :  { %v2001_v10 = vpop.f32.mrf.mxu1 }
 0xcba   :  { %v3100_v11 = vpop.f32.mrf.mxu0 }
 0xcbb   :  { %v3094_v12 = vpop.f32.mrf.mxu1 }
 0xd0c   :  { %v2142_v57 = vpop.f32.mrf.mxu0 }
 0xd0d   :  { %v2094_v13 = vpop.f32.mrf.mxu1 }
 0xd0e   :  { %v3213_v15 = vpack.i.bf16 %v2142_v57, %v2094_v13  ;;  %v3111_v17 = vpop.f32.mrf.mxu0 }
 0xd0f   :  { %v3105_v18 = vpop.f32.mrf.mxu1 }
 0xd10   :  { %3214 = vrot.lane.b32.xlu1 %v3213_v15, %s3361_s26  ;;  %v2145_v44 = vpop.f32.mrf.mxu0 }
 0xd11   :  { %v2097_v45 = vpop.f32.mrf.mxu1 }
 0xd12   :  { %v3112_v22 = vpop.f32.mrf.mxu0 }
 0xd13   :  { %v3106_v16 = vpop.f32.mrf.mxu1 }
 0xd14   :  { %v2238_v20 = vpop.f32.mrf.mxu0  ;;  %v2777_v16 = vld [vmem:[%s4071_s3 + $0x1] ss:$0 sm:$0xff] }
 0xd16   :  { %v3123_v26 = vpop.f32.mrf.mxu0 }
 0xd18   :  { %v2241_v19 = vpop.f32.mrf.mxu0 }
 0xd1a   :  { %v3124_v29 = vpop.f32.mrf.mxu0 }
 0xd1b   :  { %v2771_v29 = vld [vmem:[%s4075_s7 + $0x1] ss:$0 sm:$0xff] }
 0xd3c   :  { %v2334_v25 = vpop.f32.mrf.mxu0 }
 0xd3e   :  { %v3135_v28 = vpop.f32.mrf.mxu0 }
 0xd40   :  { %v2337_v33 = vpop.f32.mrf.mxu0 }
 0xd42   :  { %v2190_v52 = vpop.f32.mrf.mxu1  ;;  %v3136_v35 = vpop.f32.mrf.mxu0 }
 0xd43   :  { %v3218_v36 = vpack.i.bf16 %v2238_v20, %v2190_v52 }
 0xd44   :  { %v3117_v37 = vpop.f32.mrf.mxu1 }
 0xd45   :  { %3219 = vrot.lane.b32.xlu0 %v3218_v36, %s3362_s30 }
 0xd46   :  { %v2193_v38 = vpop.f32.mrf.mxu1 }
 0xd48   :  { %v3118_v39 = vpop.f32.mrf.mxu1 }
 0xd4a   :  { %v2286_v40 = vpop.f32.mrf.mxu1 }
 0xd4b   :  { %v3223_v41 = vpack.i.bf16 %v2334_v25, %v2286_v40 }
 0xd4c   :  { %v3129_v42 = vpop.f32.mrf.mxu1 }
 0xd4d   :  { %3224 = vrot.lane.b32.xlu1 %v3223_v41, %s3363_s1 }
 0xd4e   :  { %v2289_v46 = vpop.f32.mrf.mxu1 }
 0xd50   :  { %v3130_v47 = vpop.f32.mrf.mxu1 }
 0xd64   :  { %2445 = vadd.xlane.f32.xlu0 %v2444_v14 }
 0xd68   :  { %2455 = vadd.xlane.f32.xlu0 %v2454_v49 }
 0xd6c   :  { %2458 = vadd.xlane.f32.xlu0 %v2457_v30 }
 0xd71   :  { %2448 = vadd.xlane.f32.xlu1 %v2447_v51 }
 0xd82   :  { %v3215_v53 = vpop.permute.xlu1 %3214 }
 0xd83   :  { %v3217_v56 = vunpack.i.h.bf16 %v3215_v53  ;;  %v3216_v55 = vunpack.i.l.bf16 %v3215_v53 }
 0xd85   :  { %v2365_v59 = vsel %vm254_vm4, %v2046_v5, %v3217_v56  ;;  %v2364_v54 = vsel %vm254_vm4, %v1998_v27, %v3216_v55 }
 0xdb7   :  { %v3220_v43 = vpop.permute.xlu0 %3219 }
 0xdb8   :  { %v3222_v58 = vunpack.i.h.bf16 %v3220_v43  ;;  %v3221_v23 = vunpack.i.l.bf16 %v3220_v43 }
 0xdba   :  { %v2367_v61 = vsel %vm1161_vm7, %v2365_v59, %v3222_v58  ;;  %v2366_v62 = vsel %vm1161_vm7, %v2364_v54, %v3221_v23 }
 0xdbf   :  { %v3225_v24 = vpop.permute.xlu1 %3224 }
 0xdc0   :  { %v3227_v32 = vunpack.i.h.bf16 %v3225_v24  ;;  %v3226_v60 = vunpack.i.l.bf16 %v3225_v24 }
 0xdc2   :  { %v2369_v63 = vsel %vm1164_vm8, %v2367_v61, %v3227_v32  ;;  %v2368_v0 = vsel %vm1164_vm8, %v2366_v62, %v3226_v60  ;;  %v2781_v60 = vld [vmem:[%s4076_s8 + $0x1] ss:$0 sm:$0xff] }
 0xdc3   :  { %v2370_v1 = vpack.c.bf16 %v2369_v63, %v2368_v0  ;;  %v2782_v62 = vld [vmem:[%s4077_s9 + $0x1] ss:$0 sm:$0xff] }
 0xdc5   :  { %3142 = vmatmul.mubr.msk.bf16.vlgmr.msra.gmra.mxu1 %vm178_vm3, %v2370_v1 }
 0xded   :  { %v2446_v2 = vpop.xlane.xlu0 %2445 }
 0xdee   :  { %v2450_v4 = vmul.f32 0.03125, %v2446_v2 }
 0xdf0   :  { %v2462_v27 = vmul.f32 %v2450_v4, %v2450_v4  ;;  %v2470_v44 = vsub.f32 %v3793_v6, %v2450_v4 }
 0xdf1   :  { %v2456_v31 = vpop.xlane.xlu0 %2455 }
 0xdf2   :  { %v2460_v5 = vmul.f32 0.03125, %v2456_v31 }
 0xdf4   :  { %v2464_v11 = vsub.f32 %v2460_v5, %v2462_v27 }
 0xdf5   :  { %v2459_v10 = vpop.xlane.xlu0 %2458 }
 0xdf6   :  { %v2461_v57 = vmul.f32 0.03125, %v2459_v10  ;;  %v2466_v13 = vadd.f32 1e-05, %v2464_v11 }
 0xdf8   :  { %3314 = vrsqrt.f32 %v2466_v13 }
 0xdfa   :  { %v2449_v3 = vpop.xlane.xlu1 %2448 }
 0xdfb   :  { %v2451_v9 = vmul.f32 0.03125, %v2449_v3 }
 0xdfd   :  { %v2463_v12 = vmul.f32 %v2451_v9, %v2451_v9  ;;  %v2471_v20 = vsub.f32 %v3795_v8, %v2451_v9 }
 0xdff   :  { %v2465_v15 = vsub.f32 %v2461_v57, %v2463_v12 }
 0xe01   :  { %v2467_v17 = vadd.f32 1e-05, %v2465_v15 }
 0xe03   :  { %3316 = vrsqrt.f32 %v2467_v17 }
 0xe05   :  { %v3315_v18 = vpop.eup %3314 }
 0xe06   :  { %v2472_v45 = vmul.f32 %v3315_v18, %v2470_v44 }
 0xe08   :  { %v2480_v19 = vmul.f32 %v2777_v16, %v2472_v45 }
 0xe0a   :  { %v2488_v28 = vadd.f32 %v2778_v21, %v2480_v19 }
 0xe10   :  { %v3317_v22 = vpop.eup %3316 }
 0xe11   :  { %v2473_v26 = vmul.f32 %v3317_v22, %v2471_v20 }
 0xe13   :  { %v2481_v33 = vmul.f32 %v2777_v16, %v2473_v26 }
 0xe15   :  { %v2489_v37 = vadd.f32 %v2778_v21, %v2481_v33 }
 0xe85   :  { %v2433_v25 = vpop.f32.mrf.mxu1 }
 0xe86   :  { %v2434_v6 = vadd.f32 %v2771_v29, %v2433_v25 }
 0xe87   :  { %v3143_v34 = vpop.f32.mrf.mxu1 }
 0xe88   :  { %v2490_v52 = vadd.f32 %v2488_v28, %v2434_v6 }
 0xe89   :  { %v2436_v35 = vpop.f32.mrf.mxu1 }
 0xe8a   :  { %v2437_v36 = vadd.f32 %v2771_v29, %v2436_v35  ;;  %v2496_v8 = vsel %vm178_vm3, %v2490_v52, 0.0  ;;  %v2504_v38 = vmul.f32 %v2490_v52, %v2490_v52 }
 0xe8b   :  { %2497 = vadd.xlane.f32.xlu1 %v2496_v8  ;;  %v3144_v39 = vpop.f32.mrf.mxu1 }
 0xe8c   :  { %v2491_v40 = vadd.f32 %v2489_v37, %v2437_v36  ;;  %v2506_v41 = vsel %vm178_vm3, %v2504_v38, 0.0 }
 0xe8e   :  { %v2499_v42 = vsel %vm178_vm3, %v2491_v40, 0.0  ;;  %v2505_v46 = vmul.f32 %v2491_v40, %v2491_v40 }
 0xe8f   :  { %2507 = vadd.xlane.f32.xlu1 %v2506_v41  ;;  %2500 = vadd.xlane.f32.xlu0 %v2499_v42 }
 0xe90   :  { %v2509_v47 = vsel %vm178_vm3, %v2505_v46, 0.0 }
 0xe93   :  { %2510 = vadd.xlane.f32.xlu0 %v2509_v47 }
 0xf14   :  { %v2498_v14 = vpop.xlane.xlu1 %2497 }
 0xf15   :  { %v2502_v48 = vmul.f32 0.03125, %v2498_v14 }
 0xf17   :  { %v2514_v30 = vmul.f32 %v2502_v48, %v2502_v48  ;;  %v2522_v54 = vsub.f32 %v2490_v52, %v2502_v48  ;;  %v3236_v48 = vld [vmem:[%s4080_s12 + $0x8] sm:$0xff]  }
 0xf18   :  { %v2508_v49 = vpop.xlane.xlu1 %2507  ;;  %v2501_v50 = vpop.xlane.xlu0 %2500  ;;  %3146 = vmatpush3.bf16.msra.mxu0 %v3236_v48 }
 0xf19   :  { %v2512_v51 = vmul.f32 0.03125, %v2508_v49  ;;  %v2503_v53 = vmul.f32 0.03125, %v2501_v50  ;;  %v3237_v49 = vld [vmem:[%s4080_s12] sm:$0xff]   ;;  %3147 = vmatprep.subr.bf16.mxu0 %v3353_v7 }
 0xf1b   :  { %v2516_v43 = vsub.f32 %v2512_v51, %v2514_v30  ;;  %v2515_v58 = vmul.f32 %v2503_v53, %v2503_v53  ;;  %v2523_v63 = vsub.f32 %v2491_v40, %v2503_v53 }
 0xf1c   :  { %v2511_v56 = vpop.xlane.xlu0 %2510  ;;  %3148 = vmatpush3.bf16.msra.mxu0 %v3237_v49 }
 0xf1d   :  { %v2518_v55 = vadd.f32 1e-05, %v2516_v43  ;;  %v2513_v23 = vmul.f32 0.03125, %v2511_v56 }
 0xf1f   :  { %3318 = vrsqrt.f32 %v2518_v55  ;;  %v2517_v24 = vsub.f32 %v2513_v23, %v2515_v58 }
 0xf21   :  { %v2519_v59 = vadd.f32 1e-05, %v2517_v24 }
 0xf23   :  { %3320 = vrsqrt.f32 %v2519_v59 }
 0xf2c   :  { %v3319_v32 = vpop.eup %3318 }
 0xf2d   :  { %v2524_v61 = vmul.f32 %v3319_v32, %v2522_v54 }
 0xf2f   :  { %v2532_v0 = vmul.f32 %v2781_v60, %v2524_v61 }
 0xf30   :  { %v3321_v1 = vpop.eup %3320 }
 0xf31   :  { %v2540_v2 = vadd.f32 %v2782_v62, %v2532_v0  ;;  %v2525_v31 = vmul.f32 %v3321_v1, %v2523_v63  ;;  %v2783_v63 = vld [vmem:[%s4078_s10] ss:$0 sm:$0xff]  ;;  %s3364_s10 = smov [#allocation2]  }
 0xf32   :  { %s2701_s16 = sshll.u32 %s3364_s10, 4  ;;  %s2702_s16 = int_to_ptr.vmem [resolvable:$true] %s2701_s16 }
 0xf33   :  { %v2542_v3 = vsel %vm178_vm3, %v2540_v2, 0.0  ;;  %v2550_v4 = vmul.f32 %v2540_v2, %v2540_v2  ;;  %v2533_v5 = vmul.f32 %v2781_v60, %v2525_v31  ;;  %p3335_p1 = scmp.lt.s32.totalorder %s2702_s16, %s2702_s16 }
 0xf34   :  { %2543 = vadd.xlane.f32.xlu1 %v2542_v3  ;;  %v2784_v3 = vld [vmem:[%s4079_s11] ss:$0 sm:$0xff]  ;;  %s3330_s11 = scalar_lea.vmem %s2702_s16, 256 }
 0xf35   :  { %v2541_v9 = vadd.f32 %v2782_v62, %v2533_v5  ;;  %v2552_v27 = vsel %vm178_vm3, %v2550_v4, 0.0  ;;  %p3331_p0 = scmp.ne.s32.totalorder %s2702_s16, %s3330_s11  ;;  %p3336_p2 = scmp.lt.s32.totalorder %s3330_s11, %s3330_s11 }
 0xf37   :  { %v2545_v10 = vsel %vm178_vm3, %v2541_v9, 0.0  ;;  %v2551_v11 = vmul.f32 %v2541_v9, %v2541_v9  ;;  %p3337_p3 = por %p3336_p2, %p3335_p1 }
 0xf38   :  { %2553 = vadd.xlane.f32.xlu1 %v2552_v27  ;;  %2546 = vadd.xlane.f32.xlu0 %v2545_v10  ;;  %v2785_v10 = vld [vmem:[%s4081_s13] ss:$0 sm:$0xff] }
 0xf39   :  { %v2555_v12 = vsel %vm178_vm3, %v2551_v11, 0.0  ;;  %p3338_p4 = pnand %p3337_p3, %p3331_p0 }
 0xf3c   :  { %2556 = vadd.xlane.f32.xlu0 %v2555_v12 }
 0xfbd   :  { %v2544_v57 = vpop.xlane.xlu1 %2543 }
 0xfbe   :  { %v2548_v13 = vmul.f32 0.03125, %v2544_v57 }
 0xfc0   :  { %v2560_v18 = vmul.f32 %v2548_v13, %v2548_v13  ;;  %v2568_v25 = vsub.f32 %v2540_v2, %v2548_v13 }
 0xfc1   :  { %v2554_v15 = vpop.xlane.xlu1 %2553  ;;  %v2547_v17 = vpop.xlane.xlu0 %2546 }
 0xfc2   :  { %v2558_v44 = vmul.f32 0.03125, %v2554_v15  ;;  %v2549_v45 = vmul.f32 0.03125, %v2547_v17 }
 0xfc4   :  { %v2562_v22 = vsub.f32 %v2558_v44, %v2560_v18  ;;  %v2561_v26 = vmul.f32 %v2549_v45, %v2549_v45  ;;  %v2569_v33 = vsub.f32 %v2541_v9, %v2549_v45 }
 0xfc5   :  { %v2557_v16 = vpop.xlane.xlu0 %2556 }
 0xfc6   :  { %v2564_v20 = vadd.f32 1e-05, %v2562_v22  ;;  %v2559_v19 = vmul.f32 0.03125, %v2557_v16 }
 0xfc8   :  { %3322 = vrsqrt.f32 %v2564_v20  ;;  %v2563_v29 = vsub.f32 %v2559_v19, %v2561_v26 }
 0xfca   :  { %v2565_v21 = vadd.f32 1e-05, %v2563_v29 }
 0xfcc   :  { %3324 = vrsqrt.f32 %v2565_v21 }
 0xfd5   :  { %v3323_v6 = vpop.eup %3322 }
 0xfd6   :  { %v2570_v28 = vmul.f32 %v3323_v6, %v2568_v25 }
 0xfd8   :  { %v2572_v34 = vmul.f32 %v2781_v60, %v2570_v28 }
 0xfd9   :  { %v3325_v52 = vpop.eup %3324 }
 0xfda   :  { %v2574_v35 = vadd.f32 %v2782_v62, %v2572_v34  ;;  %v2571_v36 = vmul.f32 %v3325_v52, %v2569_v33 }
 0xfdc   :  { %v2576_v37 = vadd.f32 %v2574_v35, %v2540_v2  ;;  %v2573_v8 = vmul.f32 %v2781_v60, %v2571_v36 }
 0xfde   :  { %v2580_v38 = vsel %vm178_vm3, %v2576_v37, 0.0  ;;  %v2588_v39 = vmul.f32 %v2576_v37, %v2576_v37  ;;  %v2575_v40 = vadd.f32 %v2782_v62, %v2573_v8 }
 0xfdf   :  { %2581 = vadd.xlane.f32.xlu1 %v2580_v38 }
 0xfe0   :  { %v2577_v41 = vadd.f32 %v2575_v40, %v2541_v9  ;;  %v2590_v42 = vsel %vm178_vm3, %v2588_v39, 0.0 }
 0xfe2   :  { %v2583_v46 = vsel %vm178_vm3, %v2577_v41, 0.0  ;;  %v2589_v47 = vmul.f32 %v2577_v41, %v2577_v41 }
 0xfe3   :  { %2591 = vadd.xlane.f32.xlu1 %v2590_v42  ;;  %2584 = vadd.xlane.f32.xlu0 %v2583_v46 }
 0xfe4   :  { %v2593_v14 = vsel %vm178_vm3, %v2589_v47, 0.0 }
 0xfe7   :  { %2594 = vadd.xlane.f32.xlu0 %v2593_v14 }
0x1068   :  { %v2582_v50 = vpop.xlane.xlu1 %2581 }
0x1069   :  { %v2586_v30 = vmul.f32 0.03125, %v2582_v50 }
0x106b   :  { %v2598_v43 = vmul.f32 %v2586_v30, %v2586_v30  ;;  %v2606_v61 = vsub.f32 %v2576_v37, %v2586_v30 }
0x106c   :  { %v2592_v51 = vpop.xlane.xlu1 %2591  ;;  %v2585_v53 = vpop.xlane.xlu0 %2584 }
0x106d   :  { %v2596_v56 = vmul.f32 0.03125, %v2592_v51  ;;  %v2587_v55 = vmul.f32 0.03125, %v2585_v53 }
0x106f   :  { %v2600_v58 = vsub.f32 %v2596_v56, %v2598_v43  ;;  %v2599_v59 = vmul.f32 %v2587_v55, %v2587_v55  ;;  %v2607_v0 = vsub.f32 %v2577_v41, %v2587_v55 }
0x1070   :  { %v2595_v23 = vpop.xlane.xlu0 %2594 }
0x1071   :  { %v2602_v24 = vadd.f32 1e-05, %v2600_v58  ;;  %v2597_v54 = vmul.f32 0.03125, %v2595_v23 }
0x1073   :  { %3326 = vrsqrt.f32 %v2602_v24  ;;  %v2601_v32 = vsub.f32 %v2597_v54, %v2599_v59 }
0x1075   :  { %v2603_v60 = vadd.f32 1e-05, %v2601_v32 }
0x1077   :  { %3328 = vrsqrt.f32 %v2603_v60 }
0x1080   :  { %v3327_v62 = vpop.eup %3326 }
0x1081   :  { %v2608_v7 = vmul.f32 %v3327_v62, %v2606_v61 }
0x1083   :  { %v2616_v31 = vmul.f32 %v2783_v63, %v2608_v7 }
0x1084   :  { %v3329_v1 = vpop.eup %3328 }
0x1085   :  { %v2609_v2 = vmul.f32 %v3329_v1, %v2607_v0  ;;  %v2624_v5 = vadd.f32 %v2784_v3, %v2616_v31 }
0x1087   :  { %v2617_v4 = vmul.f32 %v2783_v63, %v2609_v2 }
0x1089   :  { %v2625_v9 = vadd.f32 %v2784_v3, %v2617_v4 }
0x108b   :  { %v2626_v27 = vpack.c.bf16 %v2625_v9, %v2624_v5 }
0x108d   :  { %3150 = vmatmul.mubr.msk.bf16.vlgmr.msra.gmra.mxu0 %vm178_vm3, %v2626_v27 }
0x114d   :  { %v2687_v11 = vpop.f32.mrf.mxu0 }
0x114e   :  { %v2688_v12 = vadd.f32 %v2785_v10, %v2687_v11 }
0x114f   :  { %v3151_v57 = vpop.f32.mrf.mxu0 }
0x1150   :  { %2694 = vst [vmem:[#allocation2] sm:$0xff] %v2688_v12 }
0x1151   :  { %v2690_v13 = vpop.f32.mrf.mxu0 }
0x1152   :  { %v2691_v15 = vadd.f32 %v2785_v10, %v2690_v13 }
0x1153   :  { %v3152_v17 = vpop.f32.mrf.mxu0 }
0x1154   :  { %2695 = vst [vmem:[#allocation2 + $0x8] sm:$0xff] %v2691_v15 }
0x1155   :  { %3341 = shalt.err (!%p3338_p4)
}
0x1156   :  { %s3365_s17 = smov 128  }
0x1157   :  { %2707 = dma.vmem_to_hbm [thread:$0]  %s2702_s16, 256, %s4082_s14, [#allocation3], %s3365_s17, %s3365_s17, %s3361_s26  }
0x1158   :  { %3350 = dma.done.wait [#allocation3], 256  }
0x1159   :  { %3351 = vsyncadd [#allocation3], 4294967040 }
0x115a   :  { %2711 = vsyncpa [#allocation3], 1 }

</bundles_post_ra>
